<compile_context>
chip_gen: v7x
topology: tpu7x:2x2x1
jax: 0.10.0
libtpu: 0.0.40
codegen_flags: <defaults>
</compile_context>

<pallas_src>
import functools

import jax
import jax.numpy as jnp
from jax import lax
from jax.experimental import pallas as pl
from jax.experimental.pallas import tpu as pltpu


# ---------------------------------------------------------------------------
# helpers
# ---------------------------------------------------------------------------

def _pick_tile(dim, cap, step):
    """Largest multiple of `step` that divides `dim` and is <= cap; else full dim."""
    t = min(cap, dim)
    t = (t // step) * step
    while t >= step:
        if dim % t == 0:
            return t
        t -= step
    return dim


# ---------------------------------------------------------------------------
# Tiled matmul (+ bias / gelu-tanh / fused residual-add epilogue)
# ---------------------------------------------------------------------------

def _make_matmul_kernel(has_bias, has_residual, activation):
    def kernel(*refs):
        it = iter(refs)
        x_ref = next(it)
        w_ref = next(it)
        b_ref = next(it) if has_bias else None
        r_ref = next(it) if has_residual else None
        o_ref = next(it)
        acc_ref = next(it)

        k = pl.program_id(2)

        @pl.when(k == 0)
        def _():
            acc_ref[...] = jnp.zeros_like(acc_ref)

        # bf16 operands straight into the MXU, f32 accumulation.
        acc_ref[...] += jnp.dot(x_ref[...], w_ref[...],
                                preferred_element_type=jnp.float32)

        @pl.when(k == pl.num_programs(2) - 1)
        def _():
            y = acc_ref[...]
            if b_ref is not None:
                y = y + b_ref[...].astype(jnp.float32)
            if activation == "gelu_tanh":
                y = jax.nn.gelu(y, approximate=True)   # gelu_pytorch_tanh
            if r_ref is not None:
                y = y + r_ref[...].astype(jnp.float32)  # fused residual add
            o_ref[...] = y.astype(o_ref.dtype)

    return kernel


def linear(x, w_t, b=None, activation=None, residual=None, out_dtype=None):
    """x: (M, K); w_t: (K, N) pre-transposed weight; b: (N,) or None;
    residual: optional (M, N) added in the epilogue (fused residual)."""
    M, K = x.shape
    K2, N = w_t.shape
    assert K == K2
    out_dtype = out_dtype or x.dtype

    tm = _pick_tile(M, 256, 8)
    tn = _pick_tile(N, 512, 128)
    tk = _pick_tile(K, 512, 128)
    grid = (M // tm, N // tn, K // tk)

    in_specs = [
        pl.BlockSpec((tm, tk), lambda i, j, k: (i, k)),
        pl.BlockSpec((tk, tn), lambda i, j, k: (k, j)),
    ]
    args = [x, w_t]
    if b is not None:
        in_specs.append(pl.BlockSpec((1, tn), lambda i, j, k: (0, j)))
        args.append(b.reshape(1, N))
    if residual is not None:
        # block index constant over k -> fetched once per (i, j)
        in_specs.append(pl.BlockSpec((tm, tn), lambda i, j, k: (i, j)))
        args.append(residual)

    return pl.pallas_call(
        _make_matmul_kernel(b is not None, residual is not None, activation),
        grid=grid,
        out_shape=jax.ShapeDtypeStruct((M, N), out_dtype),
        in_specs=in_specs,
        out_specs=pl.BlockSpec((tm, tn), lambda i, j, k: (i, j)),
        scratch_shapes=[pltpu.VMEM((tm, tn), jnp.float32)],
        compiler_params=pltpu.CompilerParams(
            dimension_semantics=("parallel", "parallel", "arbitrary")),
    )(*args)


# ---------------------------------------------------------------------------
# LayerNorm (FastLayerNorm semantics; residual add already fused upstream)
# ---------------------------------------------------------------------------

def _ln_kernel(x_ref, g_ref, b_ref, o_ref, *, eps):
    x = x_ref[...].astype(jnp.float32)
    mean = jnp.mean(x, axis=-1, keepdims=True)
    xc = x - mean
    var = jnp.mean(xc * xc, axis=-1, keepdims=True)
    y = xc * lax.rsqrt(var + eps)
    y = y * g_ref[...].astype(jnp.float32) + b_ref[...].astype(jnp.float32)
    o_ref[...] = y.astype(o_ref.dtype)


def layer_norm(x, gamma, beta, eps):
    """Returns (normed, residual_out) like TGI's FastLayerNorm; since residual adds are
    fused into the preceding matmul epilogue, residual_out is simply x (no copy)."""
    T, H = x.shape
    tm = _pick_tile(T, 256, 8)
    grid = (T // tm,)
    row_spec = pl.BlockSpec((tm, H), lambda i: (i, 0))
    vec_spec = pl.BlockSpec((1, H), lambda i: (0, 0))
    out = pl.pallas_call(
        functools.partial(_ln_kernel, eps=eps),
        grid=grid,
        out_shape=jax.ShapeDtypeStruct((T, H), x.dtype),
        in_specs=[row_spec, vec_spec, vec_spec],
        out_specs=row_spec,
        compiler_params=pltpu.CompilerParams(dimension_semantics=("parallel",)),
    )(x, gamma.reshape(1, H), beta.reshape(1, H))
    return out, x


# ---------------------------------------------------------------------------
# Rotary embedding (rotate-half via pltpu.roll; full-width lane-dense stores)
# ---------------------------------------------------------------------------

def _rope_kernel(q_ref, k_ref, cos_ref, sin_ref, qo_ref, ko_ref,
                 *, d, n_q, n_kv, q_scale):
    cos = cos_ref[...].astype(jnp.float32)     # (tt, d) duplicated halves
    sin = sin_ref[...].astype(jnp.float32)     # (tt, d) sign pre-folded
    half = d // 2

    def rot(x_ref_, o_ref_, n_heads, scale):
        for h in range(n_heads):
            lo, hi = h * d, (h + 1) * d
            x = x_ref_[:, lo:hi].astype(jnp.float32)              # lane-aligned slice
            y = x * cos + pltpu.roll(x, shift=half, axis=1) * sin  # XLU rotate-half
            if scale != 1.0:
                y = y * scale
            o_ref_[:, lo:hi] = y.astype(o_ref_.dtype)              # full-width store

    rot(q_ref, qo_ref, n_q, q_scale)
    rot(k_ref, ko_ref, n_kv, 1.0)


def apply_rotary_qk(q, k, cos_full, sin_full, num_heads, num_kv_heads, head_dim,
                    q_scale):
    """q: (T, H*d); k: (T, KVH*d); cos/sin: (T, d). Softmax scale folded into q."""
    T = q.shape[0]
    d = head_dim
    tt = _pick_tile(T, 256, 8)
    grid = (T // tt,)
    return pl.pallas_call(
        functools.partial(_rope_kernel, d=d, n_q=num_heads, n_kv=num_kv_heads,
                          q_scale=q_scale),
        grid=grid,
        out_shape=(jax.ShapeDtypeStruct(q.shape, q.dtype),
                   jax.ShapeDtypeStruct(k.shape, k.dtype)),
        in_specs=[
            pl.BlockSpec((tt, num_heads * d), lambda i: (i, 0)),
            pl.BlockSpec((tt, num_kv_heads * d), lambda i: (i, 0)),
            pl.BlockSpec((tt, d), lambda i: (i, 0)),
            pl.BlockSpec((tt, d), lambda i: (i, 0)),
        ],
        out_specs=(
            pl.BlockSpec((tt, num_heads * d), lambda i: (i, 0)),
            pl.BlockSpec((tt, num_kv_heads * d), lambda i: (i, 0)),
        ),
        compiler_params=pltpu.CompilerParams(dimension_semantics=("parallel",)),
    )(q, k, cos_full, sin_full)


# ---------------------------------------------------------------------------
# Causal flash attention, token-major, GQA KV reuse, DMA-free masked blocks
# ---------------------------------------------------------------------------

def _flash_kernel(q_ref, k_ref, v_ref, o_ref, m_sc, l_sc, acc_sc, *, tq, tk, G, d):
    qi = pl.program_id(1)
    ki = pl.program_id(2)
    nk = pl.num_programs(2)

    @pl.when(ki == 0)
    def _():
        m_sc[...] = jnp.full(m_sc.shape, -1e30, jnp.float32)
        l_sc[...] = jnp.zeros_like(l_sc)
        acc_sc[...] = jnp.zeros_like(acc_sc)

    compute = ki * tk <= qi * tq + (tq - 1)    # block not entirely above the diagonal
    diag = (ki + 1) * tk - 1 > qi * tq         # block straddles the diagonal

    def run(mask):
        k = k_ref[...]                          # (tk, d) -- fetched once per GQA group
        v = v_ref[...]
        for g in range(G):
            q_g = q_ref[:, g * d:(g + 1) * d]   # (tq, d) lane-aligned slice (q pre-scaled)
            s = lax.dot_general(q_g, k, (((1,), (1,)), ((), ())),
                                preferred_element_type=jnp.float32)   # (tq, tk)
            if mask is not None:
                s = jnp.where(mask, s, jnp.float32(-1e30))
            m_prev = m_sc[g]
            m_new = jnp.maximum(m_prev, jnp.max(s, axis=-1, keepdims=True))
            alpha = jnp.exp(m_prev - m_new)
            p = jnp.exp(s - m_new)
            l_sc[g] = alpha * l_sc[g] + jnp.sum(p, axis=-1, keepdims=True)
            acc_sc[g] = alpha * acc_sc[g] + jnp.dot(
                p.astype(v.dtype), v, preferred_element_type=jnp.float32)
            m_sc[g] = m_new

    @pl.when(jnp.logical_and(compute, diag))
    def _():
        # Mask built only for diagonal blocks; shared across the G query heads.
        row = qi * tq + lax.broadcasted_iota(jnp.int32, (tq, tk), 0)
        col = ki * tk + lax.broadcasted_iota(jnp.int32, (tq, tk), 1)
        run(col <= row)

    @pl.when(jnp.logical_and(compute, jnp.logical_not(diag)))
    def _():
        run(None)   # interior blocks: no iota / compare / select

    @pl.when(ki == nk - 1)
    def _():
        for g in range(G):
            inv_l = pl.reciprocal(l_sc[g], approx=True)
            o_ref[:, g * d:(g + 1) * d] = (acc_sc[g] * inv_l).astype(o_ref.dtype)


def flash_attention(q, k, v, num_heads, num_kv_heads, head_dim):
    """Causal prefill attention. q: (T, H*d) (scale already folded in),
    k/v: (T, KVH*d), all token-major. Returns (T, H*d)."""
    T = q.shape[0]
    d = head_dim
    G = num_heads // num_kv_heads
    tq = _pick_tile(T, 256, 8)
    tk = _pick_tile(T, 256, 8)

    def q_map(h, qi, ki):
        return (qi, h)

    def kv_map(h, qi, ki):
        # Clamp to the last causally-valid kv block for this qi: fully-masked grid
        # steps revisit the previous block index, so no DMA is issued for them.
        last = (qi * tq + tq - 1) // tk
        return (jnp.minimum(ki, last), h)

    return pl.pallas_call(
        functools.partial(_flash_kernel, tq=tq, tk=tk, G=G, d=d),
        grid=(num_kv_heads, T // tq, T // tk),
        out_shape=jax.ShapeDtypeStruct((T, num_heads * d), q.dtype),
        in_specs=[
            pl.BlockSpec((tq, G * d), q_map),
            pl.BlockSpec((tk, d), kv_map),
            pl.BlockSpec((tk, d), kv_map),
        ],
        out_specs=pl.BlockSpec((tq, G * d), q_map),
        scratch_shapes=[
            pltpu.VMEM((G, tq, 1), jnp.float32),   # running max
            pltpu.VMEM((G, tq, 1), jnp.float32),   # running denom
            pltpu.VMEM((G, tq, d), jnp.float32),   # output accumulator
        ],
        compiler_params=pltpu.CompilerParams(
            dimension_semantics=("parallel", "parallel", "arbitrary")),
    )(q, k, v)


# ---------------------------------------------------------------------------
# KV-cache store: in-place (aliased) per-token row DMA scatter
# ---------------------------------------------------------------------------

def _kv_store_kernel(slots_ref, k_ref, v_ref, kc_in_ref, vc_in_ref,
                     kc_out_ref, vc_out_ref, sem, *, n_tokens):
    del kc_in_ref, vc_in_ref   # aliased to the outputs; only written via DMA

    def issue(i, carry):
        s = slots_ref[i]
        pltpu.make_async_copy(k_ref.at[i], kc_out_ref.at[s], sem).start()
        pltpu.make_async_copy(v_ref.at[i], vc_out_ref.at[s], sem).start()
        return carry

    lax.fori_loop(0, n_tokens, issue, 0)

    def drain(i, carry):
        s = slots_ref[i]
        pltpu.make_async_copy(k_ref.at[i], kc_out_ref.at[s], sem).wait()
        pltpu.make_async_copy(v_ref.at[i], vc_out_ref.at[s], sem).wait()
        return carry

    lax.fori_loop(0, n_tokens, drain, 0)


def kv_cache_store(k_cache, v_cache, k_new, v_new, slots):
    """Scatter per-token K/V rows into the cache at `slots`, writing in place via
    input_output_aliases (no full-cache HBM copy)."""
    T = k_new.shape[0]
    return pl.pallas_call(
        functools.partial(_kv_store_kernel, n_tokens=T),
        out_shape=(jax.ShapeDtypeStruct(k_cache.shape, k_cache.dtype),
                   jax.ShapeDtypeStruct(v_cache.shape, v_cache.dtype)),
        in_specs=[
            pl.BlockSpec(memory_space=pltpu.MemorySpace.SMEM),   # slots
            pl.BlockSpec(memory_space=pltpu.MemorySpace.VMEM),   # new k
            pl.BlockSpec(memory_space=pltpu.MemorySpace.VMEM),   # new v
            pl.BlockSpec(memory_space=pl.ANY),                   # k cache (aliased)
            pl.BlockSpec(memory_space=pl.ANY),                   # v cache (aliased)
        ],
        out_specs=(pl.BlockSpec(memory_space=pl.ANY),
                   pl.BlockSpec(memory_space=pl.ANY)),
        scratch_shapes=[pltpu.SemaphoreType.DMA],
        input_output_aliases={3: 0, 4: 1},
        compiler_params=pltpu.CompilerParams(has_side_effects=True),
    )(slots, k_new, v_new, k_cache, v_cache)


# ---------------------------------------------------------------------------
# Model definition (glue + parameter setup in plain JAX)
# ---------------------------------------------------------------------------

class Config:
    vocab_size = 512
    hidden_size = 256
    num_attention_heads = 2
    num_key_value_heads = 1
    intermediate_size = 512
    num_hidden_layers = 2
    norm_epsilon = 1e-5
    rope_theta = 10000.0
    sliding_window = None          # -> no sliding-window masking
    use_bias = True
    hidden_act = "gelu_pytorch_tanh"
    mlp_type = "default"
    norm_type = "layer_norm"

    @property
    def head_size(self):
        return self.hidden_size // self.num_attention_heads


def init_params(cfg, key, dtype=jnp.bfloat16):
    """Deterministic synthetic weights. PyTorch nn.Linear stores (out, in); transpose
    ONCE here so kernels consume (in, out) with no per-call HBM transpose."""
    keys = iter(jax.random.split(key, 128))

    def w_t(out_dim, in_dim, scale=0.02):
        wt = jax.random.normal(next(keys), (out_dim, in_dim), dtype=jnp.float32) * scale
        return jnp.transpose(wt).astype(dtype)            # stored as (in, out)

    def bvec(n, scale=0.02):
        return (jax.random.normal(next(keys), (n,), dtype=jnp.float32) * scale).astype(dtype)

    H, I, V = cfg.hidden_size, cfg.intermediate_size, cfg.vocab_size
    nh, nkv, d = cfg.num_attention_heads, cfg.num_key_value_heads, cfg.head_size
    qkv_out = (nh + 2 * nkv) * d

    params = {
        "embed": (jax.random.normal(next(keys), (V, H), dtype=jnp.float32) * 0.02).astype(dtype),
        "norm_g": jnp.ones((H,), jnp.float32),
        "norm_b": jnp.zeros((H,), jnp.float32),
        "lm_head_wT": w_t(V, H),
        "layers": [],
    }
    for _ in range(cfg.num_hidden_layers):
        params["layers"].append({
            "ln1_g": jnp.ones((H,), jnp.float32),
            "ln1_b": jnp.zeros((H,), jnp.float32),
            "qkv_wT": w_t(qkv_out, H),
            "qkv_b": bvec(qkv_out),
            "o_wT": w_t(H, nh * d),
            "o_b": bvec(H),
            "ln2_g": jnp.ones((H,), jnp.float32),
            "ln2_b": jnp.zeros((H,), jnp.float32),
            "c_fc_wT": w_t(I, H),
            "c_fc_b": bvec(I),
            "c_proj_wT": w_t(H, I),
            "c_proj_b": bvec(H),
        })
    return params


def get_cos_sin(position_ids, head_size, theta):
    inv_freq = 1.0 / (theta ** (jnp.arange(0, head_size, 2, dtype=jnp.float32) / head_size))
    freqs = position_ids.astype(jnp.float32)[:, None] * inv_freq[None, :]   # (T, d/2)
    cos, sin = jnp.cos(freqs), jnp.sin(freqs)
    # Full-width tables for the rotate-half formulation:
    #   out = x * cos_full + roll(x, d/2) * sin_full, sign folded into first half.
    cos_full = jnp.concatenate([cos, cos], axis=-1)
    sin_full = jnp.concatenate([-sin, sin], axis=-1)
    return cos_full, sin_full


def starcoder2_forward(params, cfg, input_ids, position_ids, kv_cache, slots,
                       lm_head_indices=None):
    H = cfg.num_attention_heads
    KVH = cfg.num_key_value_heads
    d = cfg.head_size
    eps = cfg.norm_epsilon
    scale = d ** -0.5
    T = input_ids.shape[0]

    hidden = jnp.take(params["embed"], input_ids, axis=0)          # (T, hidden)
    cos_f, sin_f = get_cos_sin(position_ids, d, cfg.rope_theta)

    new_kv_cache = []
    for i, layer in enumerate(params["layers"]):
        # input_layernorm; residual adds were fused into the previous matmul epilogue,
        # so `hidden` already contains the running residual sum.
        normed, res = layer_norm(hidden, layer["ln1_g"], layer["ln1_b"], eps)

        # --- self attention ---
        qkv = linear(normed, layer["qkv_wT"], layer["qkv_b"])
        # TODO(synk): emit q/k/v as separate matmul outputs to avoid these XLA slices.
        q = qkv[:, : H * d]
        k = qkv[:, H * d:(H + KVH) * d]
        v = qkv[:, (H + KVH) * d:]

        # rotary (softmax scale folded into q, applied once per token)
        q, k = apply_rotary_qk(q, k, cos_f, sin_f, H, KVH, d, q_scale=scale)

        # kv_cache.store equivalent: in-place row scatter of roped k / raw v at `slots`
        kc, vc = kv_cache[i]
        kc, vc = kv_cache_store(kc, vc, k.reshape(T, KVH, d), v.reshape(T, KVH, d), slots)
        new_kv_cache.append((kc, vc))

        attn = flash_attention(q, k, v, H, KVH, d)                  # (T, H*d)
        # o_proj with the residual add fused into the epilogue
        attn_res = linear(attn, layer["o_wT"], layer["o_b"], residual=res)

        # post_attention_layernorm
        normed2, res2 = layer_norm(attn_res, layer["ln2_g"], layer["ln2_b"], eps)

        # --- MLP (default Starcoder2MLP: c_fc -> gelu_tanh -> c_proj + residual) ---
        h1 = linear(normed2, layer["c_fc_wT"], layer["c_fc_b"], activation="gelu_tanh")
        hidden = linear(h1, layer["c_proj_wT"], layer["c_proj_b"], residual=res2)

    # final norm
    hidden, _ = layer_norm(hidden, params["norm_g"], params["norm_b"], eps)

    if lm_head_indices is not None:
        hidden = hidden[lm_head_indices]

    # SpeculativeHead: no bias (and no zero-bias DMA)
    logits = linear(hidden, params["lm_head_wT"], None, out_dtype=jnp.float32)
    return logits, new_kv_cache


# ---------------------------------------------------------------------------
# Demo
# ---------------------------------------------------------------------------

if __name__ == "__main__":
    cfg = Config()
    key = jax.random.PRNGKey(0)
    k_params, k_ids = jax.random.split(key)

    params = init_params(cfg, k_params)

    T = 512   # multiple q/kv tiles: exercises diag, interior and DMA-skipped blocks
    input_ids = jax.random.randint(k_ids, (T,), 0, cfg.vocab_size, dtype=jnp.int32)
    position_ids = jnp.arange(T, dtype=jnp.int32)
    slots = jnp.arange(T, dtype=jnp.int32)

    cache_slots = 1024
    kv_cache = [
        (jnp.zeros((cache_slots, cfg.num_key_value_heads, cfg.head_size), jnp.bfloat16),
         jnp.zeros((cache_slots, cfg.num_key_value_heads, cfg.head_size), jnp.bfloat16))
        for _ in range(cfg.num_hidden_layers)
    ]

    logits, new_kv_cache = starcoder2_forward(
        params, cfg, input_ids, position_ids, kv_cache, slots, lm_head_indices=None)
    jax.block_until_ready(logits)
    jax.block_until_ready(new_kv_cache)
    assert logits.shape == (T, cfg.vocab_size)
    assert bool(jnp.all(jnp.isfinite(logits)))
    print("KERNEL_OK")
</pallas_src>

<mosaic_0001>
module attributes {stable_mosaic.version = 11 : i64} {
  func.func @_ln_kernel(%arg0: i32, %arg1: memref<256x256xbf16, #tpu.memory_space<vmem>>, %arg2: memref<1x256xf32, #tpu.memory_space<vmem>>, %arg3: memref<1x256xf32, #tpu.memory_space<vmem>>, %arg4: memref<256x256xbf16, #tpu.memory_space<vmem>>) attributes {dimension_semantics = [#tpu.dimension_semantics<parallel>], iteration_bounds = array<i64: 2>, scalar_prefetch = 0 : i64, scratch_operands = 0 : i64, tpu.core_type = #tpu.core_type<tc>, window_params = [{transform_indices = @transform_0, window_bounds = array<i64: 256, 256>}, {pipeline_mode = #tpu.pipeline_mode<synchronous>, transform_indices = @transform_1, window_bounds = array<i64: 1, 256>}, {pipeline_mode = #tpu.pipeline_mode<synchronous>, transform_indices = @transform_2, window_bounds = array<i64: 1, 256>}, {transform_indices = @transform_3, window_bounds = array<i64: 256, 256>}]} {
    %c0 = arith.constant 0 : index
    %c0_0 = arith.constant 0 : index
    %0 = vector.load %arg1[%c0, %c0_0] : memref<256x256xbf16, #tpu.memory_space<vmem>>, vector<256x256xbf16>
    %1 = arith.extf %0 : vector<256x256xbf16> to vector<256x256xf32>
    %cst = arith.constant dense<0.000000e+00> : vector<256xf32>
    %2 = vector.multi_reduction <add>, %1, %cst [1] : vector<256x256xf32> to vector<256xf32>
    %3 = vector.shape_cast %2 : vector<256xf32> to vector<256x1xf32>
    %cst_1 = arith.constant 2.560000e+02 : f32
    %4 = vector.broadcast %cst_1 : f32 to vector<256x1xf32>
    %5 = arith.divf %3, %4 : vector<256x1xf32>
    %6 = vector.broadcast %5 : vector<256x1xf32> to vector<256x256xf32>
    %7 = arith.subf %1, %6 : vector<256x256xf32>
    %8 = arith.mulf %7, %7 : vector<256x256xf32>
    %cst_2 = arith.constant dense<0.000000e+00> : vector<256xf32>
    %9 = vector.multi_reduction <add>, %8, %cst_2 [1] : vector<256x256xf32> to vector<256xf32>
    %10 = vector.shape_cast %9 : vector<256xf32> to vector<256x1xf32>
    %cst_3 = arith.constant 2.560000e+02 : f32
    %11 = vector.broadcast %cst_3 : f32 to vector<256x1xf32>
    %12 = arith.divf %10, %11 : vector<256x1xf32>
    %cst_4 = arith.constant 9.99999974E-6 : f32
    %13 = vector.broadcast %cst_4 : f32 to vector<256x1xf32>
    %14 = arith.addf %12, %13 : vector<256x1xf32>
    %15 = math.rsqrt %14 : vector<256x1xf32>
    %16 = vector.broadcast %15 : vector<256x1xf32> to vector<256x256xf32>
    %17 = arith.mulf %7, %16 : vector<256x256xf32>
    %c0_5 = arith.constant 0 : index
    %c0_6 = arith.constant 0 : index
    %18 = vector.load %arg2[%c0_5, %c0_6] : memref<1x256xf32, #tpu.memory_space<vmem>>, vector<1x256xf32>
    %19 = vector.broadcast %18 : vector<1x256xf32> to vector<256x256xf32>
    %20 = arith.mulf %17, %19 : vector<256x256xf32>
    %c0_7 = arith.constant 0 : index
    %c0_8 = arith.constant 0 : index
    %21 = vector.load %arg3[%c0_7, %c0_8] : memref<1x256xf32, #tpu.memory_space<vmem>>, vector<1x256xf32>
    %22 = vector.broadcast %21 : vector<1x256xf32> to vector<256x256xf32>
    %23 = arith.addf %20, %22 : vector<256x256xf32>
    %24 = arith.truncf %23 : vector<256x256xf32> to vector<256x256xbf16>
    %c0_9 = arith.constant 0 : index
    %c0_10 = arith.constant 0 : index
    %25 = vector.load %arg4[%c0_9, %c0_10] : memref<256x256xbf16, #tpu.memory_space<vmem>>, vector<256x256xbf16>
    tpu.vector_store %arg4[%c0_9, %c0_10], %24 {strides = array<i32>} : memref<256x256xbf16, #tpu.memory_space<vmem>>, vector<256x256xbf16>,
    return
  }
  func.func @transform_0(%arg0: i32) -> (i32, i32) {
    %c0_i32 = arith.constant 0 : i32
    %c0_i32_0 = arith.constant 0 : i32
    return %arg0, %c0_i32 : i32, i32
  }
  func.func @transform_1(%arg0: i32) -> (i32, i32) {
    %c0_i32 = arith.constant 0 : i32
    %c0_i32_0 = arith.constant 0 : i32
    %c0_i32_1 = arith.constant 0 : i32
    return %c0_i32, %c0_i32_0 : i32, i32
  }
  func.func @transform_2(%arg0: i32) -> (i32, i32) {
    %c0_i32 = arith.constant 0 : i32
    %c0_i32_0 = arith.constant 0 : i32
    %c0_i32_1 = arith.constant 0 : i32
    return %c0_i32, %c0_i32_0 : i32, i32
  }
  func.func @transform_3(%arg0: i32) -> (i32, i32) {
    %c0_i32 = arith.constant 0 : i32
    %c0_i32_0 = arith.constant 0 : i32
    return %arg0, %c0_i32 : i32, i32
  }
}

</mosaic_0001>

<bundles_post_ra>
// kernel: tpu_custom_call.1
= control target key start
LH: loop header
LB: loop body
LE: loop exit
PB: predicated region body
PF: predicated region fallthrough
CT: control target
= control target key end

     0   :  { %8 = vsyncpa [#allocation3], 0  ;;  %s2680_s0 = inlined_call_operand.hbm [shape: bf16[512,256], index: 0, kind: input, shape index: {}]   ;;  %s2681_s1 = inlined_call_operand.vmem [shape: f32[1,256], index: 1, kind: input, shape index: {}]   ;;  %s2682_s2 = inlined_call_operand.vmem [shape: f32[1,256], index: 2, kind: input, shape index: {}]   ;;  %s2683_s3 = inlined_call_operand.hbm [shape: bf16[512,256], index: 3, kind: output, shape index: {}]  }
   0x1   :  { %10 = vsyncpa [#allocation3 + $0x1], 0 }
   0x2   :  { %11 = vsyncpa [#allocation4], 0 }
   0x3   :  { %13 = vsyncpa [#allocation4 + $0x1], 0  ;;  %s1587_s12 = smov 0   ;;  %s1589_s13 = smov 0  }
   0x4   :  { %s1591_s14 = smov 0   ;;  %s1593_s15 = smov 0  }
   0x5 LB: > { %s1608_s16 = sadd.s32 4294967295, %s1559_s15   ;;  %s1265_s17 = sadd.s32 4294967294, %s1559_s15   ;;  %s1559_s15 = sphi %s1593_s15, %s2849_s15   ;;  %s1555_s14 = sphi %s1591_s14, %s2848_s14   ;;  %s1551_s13 = sphi %s1589_s13, %s2847_s13   ;;  %s1547_s12 = sphi %s1587_s12, %s2846_s12  }
   0x6   : > { %s1612_s18 = sadd.s32 1, %s1559_s15   ;;  %s26_s19 = sadd.s32 1, %s1555_s14 }
   0x7   : > { %s23_s20 = ssub.s32 %s1559_s15, %s1612_s18  ;;  %p33_p0 = scmp.ne.s32.totalorder %s1555_s14, %s1551_s13 }
   0x8   : > { %p24_p1 = scmp.eq.s32.totalorder %s23_s20, 0  ;;  %p34_p2 = scmp.eq.s32.totalorder %s1559_s15, 0 }
   0x9   : > { %p39_p3 = scmp.ne.s32.totalorder %s1551_s13, %s1547_s12  ;;  %p40_p4 = scmp.eq.s32.totalorder %s1608_s16, 0 }
   0xa   : > { %s1624_s21 = scalar_select %p24_p1, %s1555_s14, %s26_s19  }
   0xb   : > { %p1626_p5 = por %p34_p2, %p33_p0  ;;  %p1630_p6 = por %p40_p4, %p39_p3 }
   0xc   : > { %p105_p7 = scmp.eq.s32.totalorder %s1608_s16, 1  ;;  %p111_p8 = scmp.eq.s32.totalorder %s1265_s17, 1 }
   0xd   : > { %p1361_p10 = scmp.lt.s32.totalorder %s1559_s15, 2  ;;  %s137_s26 = sand.u32 1, %s1555_s14  }
   0xe   : > { %p1637_p11 = por %p105_p7, %p33_p0  ;;  %p1641_p12 = por %p111_p8, %p39_p3 }
   0xf   : > { %s1314_s27 = sshll.u32 %s1559_s15, 12  ;;  %s1268_s28 = sshll.u32 %s137_s26, 8 }
  0x10   : > { %s2753_s24 = scalar_select %p1637_p11, 1, 0 }
  0x11   : > { %s2754_s25 = scalar_select %p1641_p12, 1, 0 }
  0x12   : > { %s1650_s4 = scalar_lea.hbm %s2680_s0, %s1314_s27  ;;  %s141_s5 = scalar_lea.vmem [#allocation2], %s1268_s28 }
  0x13   : > { %s149_s6 = sshll.u32 %s141_s5, 4  ;;  %p1654_p13 = pnand %p1361_p10, %p1626_p5  ;;  %s1658_s6 = int_to_ptr.vmem [resolvable:$true] %s149_s6 }
  0x14   : > { %s1660_s8 = scalar_lea.sflag [#allocation3], %s137_s26  ;;  %s1463_s9 = scalar_lea.hbm %s1650_s4, 4096 }
  0x15   : > { %p1464_p0 = scmp.ne.s32.totalorder %s1650_s4, %s1463_s9  ;;  %p1465_p1 = pneg %p1654_p13 }
  0x16   : > { %s1468_s17 = scalar_lea.hbm %s2680_s0, 8192  ;;  %p1469_p4 = scmp.lt.u32.totalorder %s1650_s4, %s2680_s0 }
  0x17   : > { %p1466_p2 = pnand %p1465_p1, %p1464_p0  ;;  %p1470_p5 = scmp.lt.u32.totalorder %s1468_s17, %s1463_s9 }
  0x18   : > { %p1472_p8 = scmp.lt.u32.totalorder %s1463_s9, %s1650_s4 }
  0x19   : > { %p1467_p3 = pneg %p1466_p2  ;;  %p1471_p7 = por %p1470_p5, %p1469_p4 }
  0x1b   : > { %p1473_p10 = por %p1472_p8, %p1471_p7 }
  0x1d   : > { %p1474_p9 = pnand %p1473_p10, %p1467_p3 }
  0x1f   : > { %1477 = shalt.err (!%p1474_p9)
}
  0x20   : > { %s1478_s22 = scalar_lea.vmem %s1658_s6, 4096  ;;  %s1561_s26 = smov [#allocation2]  }
  0x21   : > { %p1479_p0 = scmp.ne.s32.totalorder %s1658_s6, %s1478_s22  ;;  %s1483_s27 = sshll.u32 %s1561_s26, 4  ;;  %s1484_s27 = int_to_ptr.vmem [resolvable:$false] %s1483_s27 }
  0x22   : > { %s1485_s28 = scalar_lea.vmem %s1484_s27, 8192  ;;  %p1486_p11 = scmp.lt.s32.totalorder %s1658_s6, %s1484_s27 }
  0x23   : > { %p1481_p2 = pnand %p1479_p0, %p1465_p1  ;;  %p1487_p4 = scmp.lt.s32.totalorder %s1485_s28, %s1478_s22 }
  0x25   : > { %p1482_p12 = pneg %p1481_p2  ;;  %p1488_p5 = por %p1487_p4, %p1486_p11 }
  0x27   : > { %p1489_p7 = pnand %p1488_p5, %p1482_p12 }
  0x29   : > { %1492 = shalt.err (!%p1489_p7)
}
  0x2a   : > { %s1562_s29 = smov 128   ;;  %s1563_s30 = smov 8  }
  0x2b   : > { %1356 = dma.hbm_to_vmem [thread:$0]  (!%p1654_p13), %s1650_s4, 4096, %s1658_s6, %s1660_s8, %s1562_s29, %s1562_s29, %s1563_s30  }
  0x2c   : > { %p1272_p9 = scmp.ge.s32.totalorder %s1559_s15, 1  ;;  %p157_p1 = scmp.lt.s32.totalorder %s1559_s15, 3 }
  0x2e   : > { %p158_p3 = pnand %p1272_p9, %p157_p1 }
  0x30   : > { %161 = sbr.rel (%p158_p3) target bundleno = 475 (0x1db), region = 32 }
  0x37   : > { %s1691_s5 = sand.u32 1, %s1551_s13  }
  0x38   : > { %s1273_s9 = sshll.u32 %s1691_s5, 8  ;;  %s164_s10 = scalar_lea.sflag [#allocation3], %s1691_s5 }
  0x39   : > { %s1697_s11 = scalar_lea.vmem [#allocation2], %s1273_s9 }
  0x3a   : > { %1538 = dma.done.wait (%p1630_p6), %s164_s10, 4096  }
  0x3b   : > { %1540 = vsyncadd (%p1630_p6), %s164_s10, 4294963200  ;;  %v1704_v0 = vld [vmem:[%s1697_s11] sm:$0xff]  ;;  %v1707_v1 = vld [vmem:[%s1697_s11 + $0x10] sm:$0xff]  ;;  %s2405_s8 = scalar_lea.vmem [#allocation5], %s1273_s9  ;;  %s1348_s17 = sshll.u32 %s1608_s16, 12 }
  0x3c   : > { %v1710_v2 = vld [vmem:[%s1697_s11 + $0x8] sm:$0xff]  ;;  %v224_v3 = vunpack.c.l.bf16 %v1704_v0  ;;  %v225_v4 = vunpack.c.h.bf16 %v1704_v0  ;;  %v228_v5 = vunpack.c.l.bf16 %v1707_v1  ;;  %v229_v6 = vunpack.c.h.bf16 %v1707_v1  ;;  %v1717_v7 = vld [vmem:[%s1697_s11 + $0x18] sm:$0xff]  ;;  %v1720_v8 = vld [vmem:[%s1697_s11 + $0x20] sm:$0xff]  ;;  %s1192_s19 = sshll.u32 %s2405_s8, 4  ;;  %s2632_s26 = scalar_lea.hbm %s2683_s3, %s1348_s17  ;;  %s2634_s19 = int_to_ptr.vmem [resolvable:$true] %s1192_s19 }
  0x3d   : > { %v226_v9 = vunpack.c.l.bf16 %v1710_v2  ;;  %v227_v10 = vunpack.c.h.bf16 %v1710_v2  ;;  %v230_v11 = vunpack.c.l.bf16 %v1717_v7  ;;  %v231_v12 = vunpack.c.h.bf16 %v1717_v7  ;;  %v1727_v13 = vld [vmem:[%s1697_s11 + $0x28] sm:$0xff]  ;;  %v1750_v22 = vld [vmem:[%s1697_s11 + $0x30] sm:$0xff]  ;;  %v1753_v23 = vld [vmem:[%s1697_s11 + $0x38] sm:$0xff]  ;;  %s1178_s16 = scalar_lea.sflag [#allocation4], %s1691_s5  ;;  %s1493_s27 = scalar_lea.vmem %s2634_s19, 4096 }
  0x3e   : > { %v288_v14 = vadd.f32 %v225_v4, %v224_v3  ;;  %v294_v15 = vadd.f32 %v229_v6, %v228_v5  ;;  %v232_v16 = vunpack.c.l.bf16 %v1720_v8  ;;  %v233_v17 = vunpack.c.h.bf16 %v1720_v8  ;;  %v1768_v30 = vld [vmem:[%s1697_s11 + $0x40] sm:$0xff]  ;;  %v1771_v31 = vld [vmem:[%s1697_s11 + $0x48] sm:$0xff]  ;;  %v1786_v38 = vld [vmem:[%s1697_s11 + $0x50] sm:$0xff]  ;;  %p1494_p6 = scmp.ne.s32.totalorder %s2634_s19, %s1493_s27  ;;  %p2843_p11 = scmp.ne.s32.totalorder %s2753_s24, 0 }
  0x3f   : > { %v291_v18 = vadd.f32 %v227_v10, %v226_v9  ;;  %v297_v19 = vadd.f32 %v231_v12, %v230_v11  ;;  %v234_v20 = vunpack.c.l.bf16 %v1727_v13  ;;  %v235_v21 = vunpack.c.h.bf16 %v1727_v13  ;;  %v1789_v39 = vld [vmem:[%s1697_s11 + $0x58] sm:$0xff]  ;;  %v1804_v46 = vld [vmem:[%s1697_s11 + $0x60] sm:$0xff]  ;;  %v1807_v47 = vld [vmem:[%s1697_s11 + $0x68] sm:$0xff]  ;;  %s1564_s28 = smov [#allocation5]  }
  0x40   : > { %289 = vadd.xlane.f32.xlu0 %v288_v14  ;;  %295 = vadd.xlane.f32.xlu1 %v294_v15  ;;  %v300_v24 = vadd.f32 %v233_v17, %v232_v16  ;;  %v236_v25 = vunpack.c.l.bf16 %v1750_v22  ;;  %v237_v27 = vunpack.c.h.bf16 %v1750_v22  ;;  %v238_v28 = vunpack.c.l.bf16 %v1753_v23  ;;  %v1822_v54 = vld [vmem:[%s1697_s11 + $0x70] sm:$0xff]  ;;  %v1825_v55 = vld [vmem:[%s1697_s11 + $0x78] sm:$0xff]  ;;  %v1840_v62 = vld [vmem:[%s1697_s11 + $0x80] sm:$0xff]  ;;  %p1495_p12 = pnand %p1494_p6, %p2843_p11  ;;  %s1497_s29 = sshll.u32 %s1564_s28, 4  ;;  %s1498_s29 = int_to_ptr.vmem [resolvable:$false] %s1497_s29 }
  0x41   : > { %v303_v26 = vadd.f32 %v235_v21, %v234_v20  ;;  %v239_v29 = vunpack.c.h.bf16 %v1753_v23  ;;  %v240_v32 = vunpack.c.l.bf16 %v1768_v30  ;;  %v241_v33 = vunpack.c.h.bf16 %v1768_v30  ;;  %v1843_v63 = vld [vmem:[%s1697_s11 + $0x88] sm:$0xff]  ;;  %s1499_s30 = scalar_lea.vmem %s1498_s29, 8192  ;;  %p1500_p8 = scmp.lt.s32.totalorder %s2634_s19, %s1498_s29 }
  0x42   : > { %v306_v34 = vadd.f32 %v237_v27, %v236_v25  ;;  %v242_v36 = vunpack.c.l.bf16 %v1771_v31  ;;  %v2729_v37 = vunpack.c.h.bf16 %v1771_v31  ;;  %v2716_v41 = vunpack.c.l.bf16 %v1786_v38  ;;  %p1496_p13 = pneg %p1495_p12  ;;  %p1501_p10 = scmp.lt.s32.totalorder %s1499_s30, %s1493_s27 }
  0x43   : > { %v309_v35 = vadd.f32 %v239_v29, %v238_v28  ;;  %v312_v40 = vadd.f32 %v241_v33, %v240_v32  ;;  %v2715_v43 = vunpack.c.h.bf16 %v1786_v38  ;;  %v2714_v44 = vunpack.c.l.bf16 %v1789_v39 }
  0x44   : > { %292 = vadd.xlane.f32.xlu0 %v291_v18  ;;  %298 = vadd.xlane.f32.xlu1 %v297_v19  ;;  %v315_v42 = vadd.f32 %v2729_v37, %v242_v36  ;;  %v2709_v45 = vunpack.c.h.bf16 %v1789_v39  ;;  %v2708_v48 = vunpack.c.l.bf16 %v1804_v46  ;;  %v2703_v49 = vunpack.c.h.bf16 %v1804_v46  ;;  %p1502_p0 = por %p1501_p10, %p1500_p8 }
  0x45   : > { %v318_v50 = vadd.f32 %v2715_v43, %v2716_v41  ;;  %v2702_v52 = vunpack.c.l.bf16 %v1807_v47  ;;  %v2697_v53 = vunpack.c.h.bf16 %v1807_v47  ;;  %v2696_v57 = vunpack.c.l.bf16 %v1822_v54  ;;  %v1966_v43 = vld [vmem:[%s1697_s11 + $0xf0] sm:$0xff]  ;;  %v1969_v41 = vld [vmem:[%s1697_s11 + $0xf8] sm:$0xff] }
  0x46   : > { %v321_v51 = vadd.f32 %v2709_v45, %v2714_v44  ;;  %v324_v56 = vadd.f32 %v2703_v49, %v2708_v48  ;;  %v2691_v59 = vunpack.c.h.bf16 %v1822_v54  ;;  %v2690_v60 = vunpack.c.l.bf16 %v1825_v55  ;;  %v1930_v49 = vld [vmem:[%s1697_s11 + $0xd0] sm:$0xff]  ;;  %v1948_v45 = vld [vmem:[%s1697_s11 + $0xe0] sm:$0xff]  ;;  %p1503_p2 = pnand %p1502_p0, %p1496_p13 }
  0x47   : > { %v327_v58 = vadd.f32 %v2697_v53, %v2702_v52  ;;  %v2685_v61 = vunpack.c.h.bf16 %v1825_v55  ;;  %v2689_v14 = vunpack.c.l.bf16 %v1840_v62  ;;  %v2686_v15 = vunpack.c.h.bf16 %v1840_v62  ;;  %v1912_v53 = vld [vmem:[%s1697_s11 + $0xc0] sm:$0xff] }
  0x48   : > { %301 = vadd.xlane.f32.xlu0 %v300_v24  ;;  %304 = vadd.xlane.f32.xlu1 %v303_v26  ;;  %v330_v18 = vadd.f32 %v2691_v59, %v2696_v57  ;;  %v2688_v24 = vunpack.c.l.bf16 %v1843_v63  ;;  %v2687_v26 = vunpack.c.h.bf16 %v1843_v63  ;;  %v1894_v59 = vld [vmem:[%s1697_s11 + $0xb0] sm:$0xff] }
  0x49   : > { %v333_v19 = vadd.f32 %v2685_v61, %v2690_v60  ;;  %v1876_v61 = vld [vmem:[%s1697_s11 + $0xa0] sm:$0xff] }
  0x4c   : > { %307 = vadd.xlane.f32.xlu0 %v306_v34  ;;  %310 = vadd.xlane.f32.xlu1 %v309_v35  ;;  %v1858_v34 = vld [vmem:[%s1697_s11 + $0x90] sm:$0xff]  ;;  %v1861_v35 = vld [vmem:[%s1697_s11 + $0x98] sm:$0xff] }
  0x50   : > { %313 = vadd.xlane.f32.xlu0 %v312_v40  ;;  %316 = vadd.xlane.f32.xlu1 %v315_v42  ;;  %v336_v40 = vadd.f32 %v2686_v15, %v2689_v14  ;;  %v2695_v42 = vunpack.c.l.bf16 %v1858_v34  ;;  %v1879_v15 = vld [vmem:[%s1697_s11 + $0xa8] sm:$0xff] }
  0x51   : > { %v2700_v14 = vunpack.c.l.bf16 %v1879_v15  ;;  %v2699_v60 = vunpack.c.h.bf16 %v1879_v15 }
  0x54   : > { %319 = vadd.xlane.f32.xlu0 %v318_v50  ;;  %322 = vadd.xlane.f32.xlu1 %v321_v51  ;;  %v339_v50 = vadd.f32 %v2687_v26, %v2688_v24  ;;  %v2692_v51 = vunpack.c.h.bf16 %v1858_v34 }
  0x56   : > { %v342_v26 = vadd.f32 %v2692_v51, %v2695_v42  ;;  %v2707_v51 = vunpack.c.l.bf16 %v1894_v59 }
  0x58   : > { %325 = vadd.xlane.f32.xlu0 %v324_v56  ;;  %328 = vadd.xlane.f32.xlu1 %v327_v58  ;;  %v2694_v56 = vunpack.c.l.bf16 %v1861_v35  ;;  %v2693_v58 = vunpack.c.h.bf16 %v1861_v35 }
  0x5a   : > { %v345_v24 = vadd.f32 %v2693_v58, %v2694_v56  ;;  %v351_v58 = vadd.f32 %v2699_v60, %v2700_v14  ;;  %v2704_v56 = vunpack.c.h.bf16 %v1894_v59 }
  0x5c   : > { %331 = vadd.xlane.f32.xlu0 %v330_v18  ;;  %334 = vadd.xlane.f32.xlu1 %v333_v19  ;;  %v2701_v18 = vunpack.c.l.bf16 %v1876_v61  ;;  %v2698_v19 = vunpack.c.h.bf16 %v1876_v61  ;;  %v354_v60 = vadd.f32 %v2704_v56, %v2707_v51  ;;  %v2720_v56 = vunpack.c.l.bf16 %v1930_v49 }
  0x60   : > { %337 = vadd.xlane.f32.xlu0 %v336_v40  ;;  %340 = vadd.xlane.f32.xlu1 %v339_v50  ;;  %v1897_v40 = vld [vmem:[%s1697_s11 + $0xb8] sm:$0xff]  ;;  %v348_v50 = vadd.f32 %v2698_v19, %v2701_v18  ;;  %v1915_v19 = vld [vmem:[%s1697_s11 + $0xc8] sm:$0xff] }
  0x61   : > { %v2706_v42 = vunpack.c.l.bf16 %v1897_v40  ;;  %v2705_v57 = vunpack.c.h.bf16 %v1897_v40  ;;  %v2712_v18 = vunpack.c.l.bf16 %v1915_v19  ;;  %v2711_v52 = vunpack.c.h.bf16 %v1915_v19 }
  0x63   : > { %v357_v14 = vadd.f32 %v2705_v57, %v2706_v42  ;;  %v363_v57 = vadd.f32 %v2711_v52, %v2712_v18  ;;  %v2719_v42 = vunpack.c.h.bf16 %v1930_v49 }
  0x64   : > { %343 = vadd.xlane.f32.xlu0 %v342_v26  ;;  %346 = vadd.xlane.f32.xlu1 %v345_v24  ;;  %v2713_v26 = vunpack.c.l.bf16 %v1912_v53  ;;  %v2710_v24 = vunpack.c.h.bf16 %v1912_v53 }
  0x65   : > { %v366_v52 = vadd.f32 %v2719_v42, %v2720_v56  ;;  %v2727_v42 = vunpack.c.l.bf16 %v1969_v41  ;;  %v2726_v56 = vunpack.c.h.bf16 %v1969_v41 }
  0x68   : > { %349 = vadd.xlane.f32.xlu0 %v348_v50  ;;  %352 = vadd.xlane.f32.xlu1 %v351_v58  ;;  %v1933_v50 = vld [vmem:[%s1697_s11 + $0xd8] sm:$0xff]  ;;  %v360_v58 = vadd.f32 %v2710_v24, %v2713_v26  ;;  %v1951_v24 = vld [vmem:[%s1697_s11 + $0xe8] sm:$0xff] }
  0x69   : > { %v2718_v51 = vunpack.c.l.bf16 %v1933_v50  ;;  %v2717_v48 = vunpack.c.h.bf16 %v1933_v50  ;;  %v2723_v26 = vunpack.c.l.bf16 %v1951_v24  ;;  %v2722_v44 = vunpack.c.h.bf16 %v1951_v24 }
  0x6b   : > { %v369_v18 = vadd.f32 %v2717_v48, %v2718_v51  ;;  %v375_v48 = vadd.f32 %v2722_v44, %v2723_v26  ;;  %v2725_v51 = vunpack.c.h.bf16 %v1966_v43 }
  0x6c   : > { %355 = vadd.xlane.f32.xlu0 %v354_v60  ;;  %358 = vadd.xlane.f32.xlu1 %v357_v14  ;;  %v2724_v60 = vunpack.c.l.bf16 %v1948_v45  ;;  %v2721_v14 = vunpack.c.h.bf16 %v1948_v45 }
  0x70   : > { %361 = vadd.xlane.f32.xlu0 %v360_v58  ;;  %364 = vadd.xlane.f32.xlu1 %v363_v57  ;;  %v372_v57 = vadd.f32 %v2721_v14, %v2724_v60  ;;  %v2728_v58 = vunpack.c.l.bf16 %v1966_v43 }
  0x72   : > { %v378_v14 = vadd.f32 %v2725_v51, %v2728_v58 }
  0x74   : > { %367 = vadd.xlane.f32.xlu0 %v366_v52  ;;  %370 = vadd.xlane.f32.xlu1 %v369_v18  ;;  %v381_v52 = vadd.f32 %v2726_v56, %v2727_v42 }
  0x78   : > { %373 = vadd.xlane.f32.xlu0 %v372_v57  ;;  %376 = vadd.xlane.f32.xlu1 %v375_v48 }
  0x7c   : > { %379 = vadd.xlane.f32.xlu0 %v378_v14  ;;  %382 = vadd.xlane.f32.xlu1 %v381_v52 }
  0xcd   : > { %v290_v18 = vpop.xlane.xlu0 %289  ;;  %v296_v44 = vpop.xlane.xlu1 %295 }
  0xce   : > { %v385_v26 = vmul.f32 0.00390625, %v290_v18  ;;  %v387_v60 = vmul.f32 0.00390625, %v296_v44 }
  0xd0   : > { %v1993_v57 = vsub.f32 %v224_v3, %v385_v26  ;;  %v1997_v48 = vsub.f32 %v225_v4, %v385_v26  ;;  %v2001_v51 = vsub.f32 %v228_v5, %v387_v60  ;;  %v2005_v14 = vsub.f32 %v229_v6, %v387_v60 }
  0xd1   : > { %v293_v52 = vpop.xlane.xlu0 %292  ;;  %v299_v56 = vpop.xlane.xlu1 %298 }
  0xd2   : > { %v386_v18 = vmul.f32 0.00390625, %v293_v52  ;;  %v388_v44 = vmul.f32 0.00390625, %v299_v56  ;;  %v481_v3 = vmul.f32 %v1993_v57, %v1993_v57  ;;  %v482_v0 = vmul.f32 %v1997_v48, %v1997_v48 }
  0xd3   : > { %v485_v4 = vmul.f32 %v2001_v51, %v2001_v51  ;;  %v486_v5 = vmul.f32 %v2005_v14, %v2005_v14 }
  0xd4   : > { %v2017_v1 = vsub.f32 %v226_v9, %v386_v18  ;;  %v2021_v6 = vsub.f32 %v227_v10, %v386_v18  ;;  %v2025_v56 = vsub.f32 %v230_v11, %v388_v44  ;;  %v2029_v26 = vsub.f32 %v231_v12, %v388_v44 }
  0xd5   : > { %v302_v60 = vpop.xlane.xlu0 %301  ;;  %v545_v52 = vadd.f32 %v482_v0, %v481_v3  ;;  %v305_v42 = vpop.xlane.xlu1 %304  ;;  %v551_v10 = vadd.f32 %v486_v5, %v485_v4 }
  0xd6   : > { %v389_v58 = vmul.f32 0.00390625, %v302_v60  ;;  %v390_v37 = vmul.f32 0.00390625, %v305_v42  ;;  %v483_v9 = vmul.f32 %v2017_v1, %v2017_v1  ;;  %v484_v2 = vmul.f32 %v2021_v6, %v2021_v6 }
  0xd7   : > { %546 = vadd.xlane.f32.xlu0 %v545_v52  ;;  %v487_v11 = vmul.f32 %v2025_v56, %v2025_v56  ;;  %v488_v7 = vmul.f32 %v2029_v26, %v2029_v26 }
  0xd8   : > { %v2041_v12 = vsub.f32 %v232_v16, %v389_v58  ;;  %v2045_v42 = vsub.f32 %v233_v17, %v389_v58  ;;  %v2049_v18 = vsub.f32 %v234_v20, %v390_v37  ;;  %v2053_v44 = vsub.f32 %v235_v21, %v390_v37 }
  0xd9   : > { %v308_v3 = vpop.xlane.xlu0 %307  ;;  %v548_v0 = vadd.f32 %v484_v2, %v483_v9  ;;  %v311_v4 = vpop.xlane.xlu1 %310  ;;  %v554_v17 = vadd.f32 %v488_v7, %v487_v11 }
  0xda   : > { %v391_v5 = vmul.f32 0.00390625, %v308_v3  ;;  %v392_v60 = vmul.f32 0.00390625, %v311_v4  ;;  %v489_v16 = vmul.f32 %v2041_v12, %v2041_v12  ;;  %v490_v8 = vmul.f32 %v2045_v42, %v2045_v42 }
  0xdb   : > { %552 = vadd.xlane.f32.xlu0 %v551_v10  ;;  %549 = vadd.xlane.f32.xlu1 %v548_v0  ;;  %v491_v20 = vmul.f32 %v2049_v18, %v2049_v18  ;;  %v492_v13 = vmul.f32 %v2053_v44, %v2053_v44  ;;  %v2756_v4 = vunpack.c.h.bf16 %v1771_v31 }
  0xdc   : > { %v2065_v21 = vsub.f32 %v236_v25, %v391_v5  ;;  %v2069_v37 = vsub.f32 %v237_v27, %v391_v5  ;;  %v2073_v58 = vsub.f32 %v238_v28, %v392_v60  ;;  %v2077_v52 = vsub.f32 %v239_v29, %v392_v60 }
  0xdd   : > { %v314_v9 = vpop.xlane.xlu0 %313  ;;  %v557_v2 = vadd.f32 %v490_v8, %v489_v16  ;;  %v317_v10 = vpop.xlane.xlu1 %316  ;;  %v560_v27 = vadd.f32 %v492_v13, %v491_v20  ;;  %v2757_v13 = vunpack.c.l.bf16 %v1786_v38 }
  0xde   : > { %v393_v11 = vmul.f32 0.00390625, %v314_v9  ;;  %v394_v7 = vmul.f32 0.00390625, %v317_v10  ;;  %v493_v25 = vmul.f32 %v2065_v21, %v2065_v21  ;;  %v494_v22 = vmul.f32 %v2069_v37, %v2069_v37 }
  0xdf   : > { %555 = vadd.xlane.f32.xlu1 %v554_v17  ;;  %558 = vadd.xlane.f32.xlu0 %v557_v2  ;;  %v495_v28 = vmul.f32 %v2073_v58, %v2073_v58  ;;  %v496_v23 = vmul.f32 %v2077_v52, %v2077_v52  ;;  %v2758_v2 = vunpack.c.h.bf16 %v1786_v38 }
  0xe0   : > { %v2089_v29 = vsub.f32 %v240_v32, %v393_v11  ;;  %v2093_v3 = vsub.f32 %v241_v33, %v393_v11  ;;  %v2097_v0 = vsub.f32 %v242_v36, %v394_v7  ;;  %v2101_v5 = vsub.f32 %v2756_v4, %v394_v7 }
  0xe1   : > { %v320_v60 = vpop.xlane.xlu0 %319  ;;  %v563_v16 = vadd.f32 %v494_v22, %v493_v25  ;;  %v323_v8 = vpop.xlane.xlu1 %322  ;;  %v566_v33 = vadd.f32 %v496_v23, %v495_v28  ;;  %v2759_v11 = vunpack.c.l.bf16 %v1789_v39  ;;  %v2760_v25 = vunpack.c.h.bf16 %v1789_v39 }
  0xe2   : > { %v395_v17 = vmul.f32 0.00390625, %v320_v60  ;;  %v396_v20 = vmul.f32 0.00390625, %v323_v8  ;;  %v497_v32 = vmul.f32 %v2089_v29, %v2089_v29  ;;  %v498_v30 = vmul.f32 %v2093_v3, %v2093_v3 }
  0xe3   : > { %561 = vadd.xlane.f32.xlu1 %v560_v27  ;;  %564 = vadd.xlane.f32.xlu0 %v563_v16  ;;  %v499_v36 = vmul.f32 %v2097_v0, %v2097_v0  ;;  %v500_v31 = vmul.f32 %v2101_v5, %v2101_v5 }
  0xe4   : > { %v2113_v9 = vsub.f32 %v2757_v13, %v395_v17  ;;  %v2117_v10 = vsub.f32 %v2758_v2, %v395_v17  ;;  %v2121_v7 = vsub.f32 %v2759_v11, %v396_v20  ;;  %v2125_v22 = vsub.f32 %v2760_v25, %v396_v20 }
  0xe5   : > { %v326_v27 = vpop.xlane.xlu0 %325  ;;  %v569_v28 = vadd.f32 %v498_v30, %v497_v32  ;;  %v329_v23 = vpop.xlane.xlu1 %328  ;;  %v572_v8 = vadd.f32 %v500_v31, %v499_v36  ;;  %v2761_v20 = vunpack.c.l.bf16 %v1804_v46  ;;  %v2762_v30 = vunpack.c.h.bf16 %v1804_v46 }
  0xe6   : > { %v397_v4 = vmul.f32 0.00390625, %v326_v27  ;;  %v398_v60 = vmul.f32 0.00390625, %v329_v23  ;;  %v501_v16 = vmul.f32 %v2113_v9, %v2113_v9  ;;  %v502_v38 = vmul.f32 %v2117_v10, %v2117_v10 }
  0xe7   : > { %567 = vadd.xlane.f32.xlu1 %v566_v33  ;;  %570 = vadd.xlane.f32.xlu0 %v569_v28  ;;  %v503_v17 = vmul.f32 %v2121_v7, %v2121_v7  ;;  %v504_v39 = vmul.f32 %v2125_v22, %v2125_v22  ;;  %v2763_v2 = vunpack.c.l.bf16 %v1807_v47  ;;  %v2765_v33 = vunpack.c.h.bf16 %v1807_v47 }
  0xe8   : > { %v2137_v32 = vsub.f32 %v2761_v20, %v397_v4  ;;  %v2141_v13 = vsub.f32 %v2762_v30, %v397_v4  ;;  %v575_v25 = vadd.f32 %v502_v38, %v501_v16  ;;  %v2768_v38 = vunpack.c.h.bf16 %v1822_v54 }
  0xe9   : > { %v2145_v11 = vsub.f32 %v2763_v2, %v398_v60  ;;  %v2149_v36 = vsub.f32 %v2765_v33, %v398_v60  ;;  %v332_v31 = vpop.xlane.xlu0 %331  ;;  %v335_v27 = vpop.xlane.xlu1 %334  ;;  %v578_v4 = vadd.f32 %v504_v39, %v503_v17  ;;  %v2767_v60 = vunpack.c.l.bf16 %v1822_v54 }
  0xea   : > { %v399_v28 = vmul.f32 0.00390625, %v332_v31  ;;  %v400_v23 = vmul.f32 0.00390625, %v335_v27  ;;  %v505_v20 = vmul.f32 %v2137_v32, %v2137_v32  ;;  %v506_v46 = vmul.f32 %v2141_v13, %v2141_v13 }
  0xeb   : > { %2764 = vst [vmem:[#allocation8_spill] sm:$0xff] %v2145_v11  ;;  %2766 = vst [vmem:[#allocation9_spill] sm:$0xff] %v2149_v36  ;;  %573 = vadd.xlane.f32.xlu1 %v572_v8  ;;  %576 = vadd.xlane.f32.xlu0 %v575_v25  ;;  %v507_v30 = vmul.f32 %v2145_v11, %v2145_v11  ;;  %v508_v47 = vmul.f32 %v2149_v36, %v2149_v36  ;;  %v2769_v33 = vunpack.c.l.bf16 %v1825_v55 }
  0xec   : > { %v2161_v16 = vsub.f32 %v2767_v60, %v399_v28  ;;  %v2165_v2 = vsub.f32 %v2768_v38, %v399_v28  ;;  %v2771_v8 = vunpack.c.h.bf16 %v1825_v55  ;;  %v581_v25 = vadd.f32 %v506_v46, %v505_v20 }
  0xed   : > { %v2169_v31 = vsub.f32 %v2769_v33, %v400_v23  ;;  %v338_v39 = vpop.xlane.xlu0 %337  ;;  %v341_v27 = vpop.xlane.xlu1 %340  ;;  %v584_v28 = vadd.f32 %v508_v47, %v507_v30  ;;  %v2774_v46 = vunpack.c.h.bf16 %v1840_v62 }
  0xee   : > { %v2173_v17 = vsub.f32 %v2771_v8, %v400_v23  ;;  %v401_v36 = vmul.f32 0.00390625, %v338_v39  ;;  %v402_v11 = vmul.f32 0.00390625, %v341_v27  ;;  %v509_v60 = vmul.f32 %v2161_v16, %v2161_v16 }
  0xef   : > { %2770 = vst [vmem:[#allocation10_spill] sm:$0xff] %v2169_v31  ;;  %v510_v54 = vmul.f32 %v2165_v2, %v2165_v2  ;;  %579 = vadd.xlane.f32.xlu1 %v578_v4  ;;  %582 = vadd.xlane.f32.xlu0 %v581_v25  ;;  %v511_v38 = vmul.f32 %v2169_v31, %v2169_v31  ;;  %v2773_v23 = vunpack.c.l.bf16 %v1840_v62  ;;  %v2775_v8 = vunpack.c.l.bf16 %v1843_v63 }
  0xf0   : > { %2772 = vst [vmem:[#allocation11_spill] sm:$0xff] %v2173_v17  ;;  %v512_v55 = vmul.f32 %v2173_v17, %v2173_v17  ;;  %v2189_v33 = vsub.f32 %v2774_v46, %v401_v36  ;;  %v2777_v4 = vunpack.c.h.bf16 %v1843_v63 }
  0xf1   : > { %v2185_v20 = vsub.f32 %v2773_v23, %v401_v36  ;;  %v2193_v39 = vsub.f32 %v2775_v8, %v402_v11  ;;  %v344_v47 = vpop.xlane.xlu0 %343  ;;  %v587_v25 = vadd.f32 %v510_v54, %v509_v60  ;;  %v347_v27 = vpop.xlane.xlu1 %346  ;;  %v2780_v54 = vunpack.c.h.bf16 %v1858_v34 }
  0xf2   : > { %v2197_v30 = vsub.f32 %v2777_v4, %v402_v11  ;;  %v403_v17 = vmul.f32 0.00390625, %v344_v47  ;;  %v404_v31 = vmul.f32 0.00390625, %v347_v27  ;;  %v514_v62 = vmul.f32 %v2189_v33, %v2189_v33 }
  0xf3   : > { %2776 = vst [vmem:[#allocation12_spill] sm:$0xff] %v2193_v39  ;;  %v513_v23 = vmul.f32 %v2185_v20, %v2185_v20  ;;  %585 = vadd.xlane.f32.xlu1 %v584_v28  ;;  %588 = vadd.xlane.f32.xlu0 %v587_v25  ;;  %v590_v36 = vadd.f32 %v512_v55, %v511_v38  ;;  %v2779_v11 = vunpack.c.l.bf16 %v1858_v34  ;;  %v2781_v4 = vunpack.c.l.bf16 %v1861_v35 }
  0xf4   : > { %2778 = vst [vmem:[#allocation13_spill] sm:$0xff] %v2197_v30  ;;  %v515_v46 = vmul.f32 %v2193_v39, %v2193_v39  ;;  %v516_v63 = vmul.f32 %v2197_v30, %v2197_v30  ;;  %v2213_v8 = vsub.f32 %v2780_v54, %v403_v17  ;;  %v2783_v28 = vunpack.c.h.bf16 %v1861_v35 }
  0xf5   : > { %v2209_v60 = vsub.f32 %v2779_v11, %v403_v17  ;;  %v2217_v47 = vsub.f32 %v2781_v4, %v404_v31  ;;  %v350_v55 = vpop.xlane.xlu0 %349  ;;  %v593_v25 = vadd.f32 %v514_v62, %v513_v23  ;;  %v353_v27 = vpop.xlane.xlu1 %352  ;;  %v2786_v62 = vunpack.c.h.bf16 %v1876_v61 }
  0xf6   : > { %v2221_v38 = vsub.f32 %v2783_v28, %v404_v31  ;;  %v405_v30 = vmul.f32 0.00390625, %v350_v55  ;;  %v406_v39 = vmul.f32 0.00390625, %v353_v27  ;;  %v518_v34 = vmul.f32 %v2213_v8, %v2213_v8 }
  0xf7   : > { %2782 = vst [vmem:[#allocation14_spill] sm:$0xff] %v2217_v47  ;;  %v517_v11 = vmul.f32 %v2209_v60, %v2209_v60  ;;  %591 = vadd.xlane.f32.xlu1 %v590_v36  ;;  %594 = vadd.xlane.f32.xlu0 %v593_v25  ;;  %v596_v17 = vadd.f32 %v516_v63, %v515_v46  ;;  %v2785_v31 = vunpack.c.l.bf16 %v1876_v61  ;;  %v2787_v28 = vunpack.c.l.bf16 %v1879_v15 }
  0xf8   : > { %2784 = vst [vmem:[#allocation15_spill] sm:$0xff] %v2221_v38  ;;  %v519_v54 = vmul.f32 %v2217_v47, %v2217_v47  ;;  %v520_v35 = vmul.f32 %v2221_v38, %v2221_v38  ;;  %v2237_v4 = vsub.f32 %v2786_v62, %v405_v30  ;;  %v2789_v36 = vunpack.c.h.bf16 %v1879_v15 }
  0xf9   : > { %v2233_v23 = vsub.f32 %v2785_v31, %v405_v30  ;;  %v2241_v55 = vsub.f32 %v2787_v28, %v406_v39  ;;  %v356_v63 = vpop.xlane.xlu0 %355  ;;  %v599_v25 = vadd.f32 %v518_v34, %v517_v11  ;;  %v359_v27 = vpop.xlane.xlu1 %358  ;;  %v2792_v34 = vunpack.c.h.bf16 %v1894_v59 }
  0xfa   : > { %v2245_v46 = vsub.f32 %v2789_v36, %v406_v39  ;;  %v407_v38 = vmul.f32 0.00390625, %v356_v63  ;;  %v408_v47 = vmul.f32 0.00390625, %v359_v27  ;;  %v522_v61 = vmul.f32 %v2237_v4, %v2237_v4 }
  0xfb   : > { %2788 = vst [vmem:[#allocation16_spill] sm:$0xff] %v2241_v55  ;;  %v521_v31 = vmul.f32 %v2233_v23, %v2233_v23  ;;  %597 = vadd.xlane.f32.xlu1 %v596_v17  ;;  %600 = vadd.xlane.f32.xlu0 %v599_v25  ;;  %v602_v30 = vadd.f32 %v520_v35, %v519_v54  ;;  %v2791_v39 = vunpack.c.l.bf16 %v1894_v59  ;;  %v2793_v36 = vunpack.c.l.bf16 %v1897_v40 }
  0xfc   : > { %2790 = vst [vmem:[#allocation17_spill] sm:$0xff] %v2245_v46  ;;  %v523_v62 = vmul.f32 %v2241_v55, %v2241_v55  ;;  %v524_v15 = vmul.f32 %v2245_v46, %v2245_v46  ;;  %v2261_v28 = vsub.f32 %v2792_v34, %v407_v38  ;;  %v2795_v17 = vunpack.c.h.bf16 %v1897_v40 }
  0xfd   : > { %v2257_v11 = vsub.f32 %v2791_v39, %v407_v38  ;;  %v2265_v63 = vsub.f32 %v2793_v36, %v408_v47  ;;  %v362_v35 = vpop.xlane.xlu0 %361  ;;  %v605_v25 = vadd.f32 %v522_v61, %v521_v31  ;;  %v365_v27 = vpop.xlane.xlu1 %364  ;;  %v2798_v61 = vunpack.c.h.bf16 %v1912_v53 }
  0xfe   : > { %v2269_v54 = vsub.f32 %v2795_v17, %v408_v47  ;;  %v409_v46 = vmul.f32 0.00390625, %v362_v35  ;;  %v410_v55 = vmul.f32 0.00390625, %v365_v27  ;;  %v526_v59 = vmul.f32 %v2261_v28, %v2261_v28 }
  0xff   : > { %2794 = vst [vmem:[#allocation18_spill] sm:$0xff] %v2265_v63  ;;  %v525_v39 = vmul.f32 %v2257_v11, %v2257_v11  ;;  %603 = vadd.xlane.f32.xlu1 %v602_v30  ;;  %606 = vadd.xlane.f32.xlu0 %v605_v25  ;;  %v608_v38 = vadd.f32 %v524_v15, %v523_v62  ;;  %v2797_v47 = vunpack.c.l.bf16 %v1912_v53  ;;  %v2799_v17 = vunpack.c.l.bf16 %v1915_v19 }
 0x100   : > { %2796 = vst [vmem:[#allocation19_spill] sm:$0xff] %v2269_v54  ;;  %v527_v34 = vmul.f32 %v2265_v63, %v2265_v63  ;;  %v528_v40 = vmul.f32 %v2269_v54, %v2269_v54  ;;  %v2285_v36 = vsub.f32 %v2798_v61, %v409_v46  ;;  %v2801_v30 = vunpack.c.h.bf16 %v1915_v19 }
 0x101   : > { %v2281_v31 = vsub.f32 %v2797_v47, %v409_v46  ;;  %v2289_v35 = vsub.f32 %v2799_v17, %v410_v55  ;;  %v368_v15 = vpop.xlane.xlu0 %367  ;;  %v611_v25 = vadd.f32 %v526_v59, %v525_v39  ;;  %v371_v27 = vpop.xlane.xlu1 %370  ;;  %v2804_v59 = vunpack.c.h.bf16 %v1930_v49 }
 0x102   : > { %v2293_v62 = vsub.f32 %v2801_v30, %v410_v55  ;;  %v411_v54 = vmul.f32 0.00390625, %v368_v15  ;;  %v412_v63 = vmul.f32 0.00390625, %v371_v27  ;;  %v530_v53 = vmul.f32 %v2285_v36, %v2285_v36 }
 0x103   : > { %2800 = vst [vmem:[#allocation20_spill] sm:$0xff] %v2289_v35  ;;  %v529_v47 = vmul.f32 %v2281_v31, %v2281_v31  ;;  %609 = vadd.xlane.f32.xlu1 %v608_v38  ;;  %612 = vadd.xlane.f32.xlu0 %v611_v25  ;;  %v614_v46 = vadd.f32 %v528_v40, %v527_v34  ;;  %v2803_v55 = vunpack.c.l.bf16 %v1930_v49  ;;  %v2805_v30 = vunpack.c.l.bf16 %v1933_v50 }
 0x104   : > { %2802 = vst [vmem:[#allocation21_spill] sm:$0xff] %v2293_v62  ;;  %v531_v61 = vmul.f32 %v2289_v35, %v2289_v35  ;;  %v532_v19 = vmul.f32 %v2293_v62, %v2293_v62  ;;  %v2309_v17 = vsub.f32 %v2804_v59, %v411_v54  ;;  %v2807_v38 = vunpack.c.h.bf16 %v1933_v50 }
 0x105   : > { %v2305_v39 = vsub.f32 %v2803_v55, %v411_v54  ;;  %v2313_v15 = vsub.f32 %v2805_v30, %v412_v63  ;;  %v374_v40 = vpop.xlane.xlu0 %373  ;;  %v617_v25 = vadd.f32 %v530_v53, %v529_v47  ;;  %v377_v27 = vpop.xlane.xlu1 %376  ;;  %v2810_v53 = vunpack.c.h.bf16 %v1948_v45 }
 0x106   : > { %v2317_v34 = vsub.f32 %v2807_v38, %v412_v63  ;;  %v413_v62 = vmul.f32 0.00390625, %v374_v40  ;;  %v414_v35 = vmul.f32 0.00390625, %v377_v27  ;;  %v534_v49 = vmul.f32 %v2309_v17, %v2309_v17 }
 0x107   : > { %2806 = vst [vmem:[#allocation22_spill] sm:$0xff] %v2313_v15  ;;  %v533_v55 = vmul.f32 %v2305_v39, %v2305_v39  ;;  %615 = vadd.xlane.f32.xlu1 %v614_v46  ;;  %618 = vadd.xlane.f32.xlu0 %v617_v25  ;;  %v620_v54 = vadd.f32 %v532_v19, %v531_v61  ;;  %v2809_v63 = vunpack.c.l.bf16 %v1948_v45  ;;  %v2811_v38 = vunpack.c.l.bf16 %v1951_v24 }
 0x108   : > { %2808 = vst [vmem:[#allocation23_spill] sm:$0xff] %v2317_v34  ;;  %v535_v59 = vmul.f32 %v2313_v15, %v2313_v15  ;;  %v536_v50 = vmul.f32 %v2317_v34, %v2317_v34  ;;  %v2333_v30 = vsub.f32 %v2810_v53, %v413_v62  ;;  %v2812_v46 = vunpack.c.h.bf16 %v1951_v24 }
 0x109   : > { %v2329_v47 = vsub.f32 %v2809_v63, %v413_v62  ;;  %v2337_v40 = vsub.f32 %v2811_v38, %v414_v35  ;;  %v380_v19 = vpop.xlane.xlu0 %379  ;;  %v623_v25 = vadd.f32 %v534_v49, %v533_v55  ;;  %v383_v27 = vpop.xlane.xlu1 %382  ;;  %v2816_v49 = vunpack.c.h.bf16 %v1966_v43 }
 0x10a   : > { %v2341_v61 = vsub.f32 %v2812_v46, %v414_v35  ;;  %v415_v34 = vmul.f32 0.00390625, %v380_v19  ;;  %v416_v15 = vmul.f32 0.00390625, %v383_v27  ;;  %v538_v45 = vmul.f32 %v2333_v30, %v2333_v30 }
 0x10b   : > { %v537_v63 = vmul.f32 %v2329_v47, %v2329_v47  ;;  %621 = vadd.xlane.f32.xlu1 %v620_v54  ;;  %624 = vadd.xlane.f32.xlu0 %v623_v25  ;;  %v626_v62 = vadd.f32 %v536_v50, %v535_v59  ;;  %v539_v53 = vmul.f32 %v2337_v40, %v2337_v40  ;;  %v2814_v35 = vunpack.c.l.bf16 %v1966_v43 }
 0x10c   : > { %2813 = vst [vmem:[#allocation24_spill] sm:$0xff] %v2341_v61  ;;  %v540_v24 = vmul.f32 %v2341_v61, %v2341_v61  ;;  %v2357_v38 = vsub.f32 %v2816_v49, %v415_v34  ;;  %v2818_v46 = vunpack.c.l.bf16 %v1969_v41  ;;  %v2820_v54 = vunpack.c.h.bf16 %v1969_v41 }
 0x10d   : > { %v2353_v55 = vsub.f32 %v2814_v35, %v415_v34  ;;  %v629_v50 = vadd.f32 %v538_v45, %v537_v63  ;;  %v803_v45 = vlaneseq }
 0x10e   : > { %2817 = vst [vmem:[#allocation26_spill] sm:$0xff] %v2357_v38  ;;  %v2361_v19 = vsub.f32 %v2818_v46, %v416_v15  ;;  %v2365_v59 = vsub.f32 %v2820_v54, %v416_v15  ;;  %v542_v27 = vmul.f32 %v2357_v38, %v2357_v38  ;;  %v632_v43 = vadd.f32 %v540_v24, %v539_v53 }
 0x10f   : > { %2815 = vst [vmem:[#allocation25_spill] sm:$0xff] %v2353_v55  ;;  %v541_v25 = vmul.f32 %v2353_v55, %v2353_v55  ;;  %627 = vadd.xlane.f32.xlu1 %v626_v62  ;;  %630 = vadd.xlane.f32.xlu0 %v629_v50  ;;  %v804_v24 = vshrl.u32 %v803_v45, 7 }
 0x110   : > { %2819 = vst [vmem:[#allocation27_spill] sm:$0xff] %v2361_v19  ;;  %2821 = vst [vmem:[#allocation28_spill] sm:$0xff] %v2365_v59  ;;  %v543_v34 = vmul.f32 %v2361_v19, %v2361_v19  ;;  %v544_v35 = vmul.f32 %v2365_v59, %v2365_v59 }
 0x111   : > { %v635_v49 = vadd.f32 %v542_v27, %v541_v25 }
 0x112   : > { %v638_v41 = vadd.f32 %v544_v35, %v543_v34  ;;  %v809_v34 = vsub.s32 1, %v804_v24  ;;  %v801_v35 = vld [vmem:[%s2681_s1] sm:$0x3] }
 0x113   : > { %633 = vadd.xlane.f32.xlu1 %v632_v43  ;;  %636 = vadd.xlane.f32.xlu0 %v635_v49  ;;  %v805_v43 = vsub.s32 0, %v804_v24 }
 0x117   : > { %639 = vadd.xlane.f32.xlu1 %v638_v41 }
 0x164   : > { %v547_v15 = vpop.xlane.xlu0 %546 }
 0x165   : > { %v641_v63 = vmul.f32 0.00390625, %v547_v15 }
 0x167   : > { %v673_v46 = vadd.f32 1e-05, %v641_v63 }
 0x168   : > { %v550_v54 = vpop.xlane.xlu1 %549  ;;  %v553_v38 = vpop.xlane.xlu0 %552 }
 0x169   : > { %1399 = vrsqrt.f32 %v673_v46  ;;  %v642_v62 = vmul.f32 0.00390625, %v550_v54  ;;  %v643_v53 = vmul.f32 0.00390625, %v553_v38  ;;  %v877_v38 = vld [vmem:[%s2682_s2] sm:$0x3] }
 0x16a   : > { %v2387_v24 = vrot.slane %v877_v38, %v809_v34 }
 0x16b   : > { %v674_v50 = vadd.f32 1e-05, %v642_v62  ;;  %v675_v19 = vadd.f32 1e-05, %v643_v53  ;;  %v2385_v53 = vrot.slane %v877_v38, %v805_v43 }
 0x16c   : > { %v556_v55 = vpop.xlane.xlu1 %555  ;;  %v559_v61 = vpop.xlane.xlu0 %558 }
 0x16d   : > { %1401 = vrsqrt.f32 %v674_v50  ;;  %v644_v25 = vmul.f32 0.00390625, %v556_v55  ;;  %v645_v27 = vmul.f32 0.00390625, %v559_v61  ;;  %v2381_v55 = vrot.slane %v801_v35, %v805_v43 }
 0x16e   : > { %1403 = vrsqrt.f32 %v675_v19  ;;  %v2383_v61 = vrot.slane %v801_v35, %v809_v34 }
 0x16f   : > { %v676_v49 = vadd.f32 1e-05, %v644_v25  ;;  %v677_v41 = vadd.f32 1e-05, %v645_v27 }
 0x170   : > { %v562_v15 = vpop.xlane.xlu1 %561  ;;  %v565_v63 = vpop.xlane.xlu0 %564 }
 0x171   : > { %1405 = vrsqrt.f32 %v676_v49  ;;  %v646_v45 = vmul.f32 0.00390625, %v562_v15  ;;  %v647_v46 = vmul.f32 0.00390625, %v565_v63 }
 0x172   : > { %1407 = vrsqrt.f32 %v677_v41 }
 0x173   : > { %v1400_v19 = vpop.eup %1399  ;;  %v678_v54 = vadd.f32 1e-05, %v646_v45  ;;  %v679_v62 = vadd.f32 1e-05, %v647_v46 }
 0x174   : > { %v737_v50 = vmul.f32 %v1400_v19, %v1993_v57  ;;  %v738_v25 = vmul.f32 %v1400_v19, %v1997_v48  ;;  %v568_v27 = vpop.xlane.xlu1 %567  ;;  %v571_v49 = vpop.xlane.xlu0 %570 }
 0x175   : > { %1409 = vrsqrt.f32 %v678_v54  ;;  %v648_v15 = vmul.f32 0.00390625, %v568_v27  ;;  %v649_v63 = vmul.f32 0.00390625, %v571_v49 }
 0x176   : > { %v813_v35 = vmul.f32 %v2381_v55, %v737_v50  ;;  %v814_v41 = vmul.f32 %v2383_v61, %v738_v25  ;;  %1411 = vrsqrt.f32 %v679_v62 }
 0x177   : > { %v1402_v45 = vpop.eup %1401  ;;  %v680_v46 = vadd.f32 1e-05, %v648_v15  ;;  %v681_v43 = vadd.f32 1e-05, %v649_v63 }
 0x178   : > { %v1404_v59 = vpop.eup %1403  ;;  %v889_v34 = vadd.f32 %v2385_v53, %v813_v35  ;;  %v890_v57 = vadd.f32 %v2387_v24, %v814_v41  ;;  %v739_v48 = vmul.f32 %v1402_v45, %v2017_v1  ;;  %v740_v38 = vmul.f32 %v1402_v45, %v2021_v6  ;;  %v574_v19 = vpop.xlane.xlu1 %573 }
 0x179   : > { %v577_v54 = vpop.xlane.xlu0 %576  ;;  %v741_v50 = vmul.f32 %v1404_v59, %v2001_v51  ;;  %v742_v25 = vmul.f32 %v1404_v59, %v2005_v14  ;;  %1413 = vrsqrt.f32 %v680_v46  ;;  %v650_v62 = vmul.f32 0.00390625, %v574_v19 }
 0x17a   : > { %v1315_v27 = vpack.c.bf16 %v890_v57, %v889_v34  ;;  %v815_v49 = vmul.f32 %v2381_v55, %v739_v48  ;;  %v816_v15 = vmul.f32 %v2383_v61, %v740_v38  ;;  %1415 = vrsqrt.f32 %v681_v43 }
 0x17b   : > { %v1406_v63 = vpop.eup %1405  ;;  %v817_v1 = vmul.f32 %v2381_v55, %v741_v50  ;;  %v818_v6 = vmul.f32 %v2383_v61, %v742_v25  ;;  %v682_v35 = vadd.f32 1e-05, %v650_v62  ;;  %v651_v41 = vmul.f32 0.00390625, %v577_v54 }
 0x17c   : > { %v1408_v45 = vpop.eup %1407  ;;  %1145 = vst [vmem:[%s2405_s8] sm:$0xff] %v1315_v27  ;;  %v891_v51 = vadd.f32 %v2385_v53, %v815_v49  ;;  %v892_v14 = vadd.f32 %v2387_v24, %v816_v15  ;;  %v743_v59 = vmul.f32 %v1406_v63, %v2025_v56  ;;  %v744_v46 = vmul.f32 %v1406_v63, %v2029_v26  ;;  %v580_v43 = vpop.xlane.xlu1 %579 }
 0x17d   : > { %v583_v34 = vpop.xlane.xlu0 %582  ;;  %v893_v57 = vadd.f32 %v2385_v53, %v817_v1  ;;  %v894_v48 = vadd.f32 %v2387_v24, %v818_v6  ;;  %v745_v38 = vmul.f32 %v1408_v45, %v2041_v12  ;;  %v746_v19 = vmul.f32 %v1408_v45, %v2045_v42 }
 0x17e   : > { %v1316_v54 = vpack.c.bf16 %v892_v14, %v891_v51  ;;  %v819_v50 = vmul.f32 %v2381_v55, %v743_v59  ;;  %v820_v25 = vmul.f32 %v2383_v61, %v744_v46  ;;  %1417 = vrsqrt.f32 %v682_v35 }
 0x17f   : > { %v1410_v56 = vpop.eup %1409  ;;  %v1317_v26 = vpack.c.bf16 %v894_v48, %v893_v57  ;;  %v821_v62 = vmul.f32 %v2381_v55, %v745_v38  ;;  %v822_v27 = vmul.f32 %v2383_v61, %v746_v19  ;;  %v683_v49 = vadd.f32 1e-05, %v651_v41 }
 0x180   : > { %v1412_v15 = vpop.eup %1411  ;;  %1146 = vst [vmem:[%s2405_s8 + $0x8] sm:$0xff] %v1316_v54  ;;  %v895_v12 = vadd.f32 %v2385_v53, %v819_v50  ;;  %v896_v42 = vadd.f32 %v2387_v24, %v820_v25  ;;  %v747_v63 = vmul.f32 %v1410_v56, %v2049_v18  ;;  %v748_v1 = vmul.f32 %v1410_v56, %v2053_v44  ;;  %v586_v6 = vpop.xlane.xlu1 %585 }
 0x181   : > { %v589_v45 = vpop.xlane.xlu0 %588  ;;  %1147 = vst [vmem:[%s2405_s8 + $0x10] sm:$0xff] %v1317_v26  ;;  %v897_v35 = vadd.f32 %v2385_v53, %v821_v62  ;;  %v898_v51 = vadd.f32 %v2387_v24, %v822_v27  ;;  %v749_v41 = vmul.f32 %v1412_v15, %v2065_v21  ;;  %v750_v14 = vmul.f32 %v1412_v15, %v2069_v37 }
 0x182   : > { %v1318_v59 = vpack.c.bf16 %v896_v42, %v895_v12  ;;  %v823_v46 = vmul.f32 %v2381_v55, %v747_v63  ;;  %v824_v18 = vmul.f32 %v2383_v61, %v748_v1  ;;  %1419 = vrsqrt.f32 %v683_v49 }
 0x183   : > { %v1414_v44 = vpop.eup %1413  ;;  %v1319_v57 = vpack.c.bf16 %v898_v51, %v897_v35  ;;  %v825_v48 = vmul.f32 %v2381_v55, %v749_v41  ;;  %v826_v38 = vmul.f32 %v2383_v61, %v750_v14  ;;  %v652_v19 = vmul.f32 0.00390625, %v580_v43 }
 0x184   : > { %v1416_v54 = vpop.eup %1415  ;;  %1148 = vst [vmem:[%s2405_s8 + $0x18] sm:$0xff] %v1318_v59  ;;  %v899_v21 = vadd.f32 %v2385_v53, %v823_v46  ;;  %v900_v37 = vadd.f32 %v2387_v24, %v824_v18  ;;  %v751_v50 = vmul.f32 %v1414_v44, %v2073_v58  ;;  %v752_v25 = vmul.f32 %v1414_v44, %v2077_v52  ;;  %v592_v56 = vpop.xlane.xlu1 %591 }
 0x185   : > { %v595_v26 = vpop.xlane.xlu0 %594  ;;  %1149 = vst [vmem:[%s2405_s8 + $0x20] sm:$0xff] %v1319_v57  ;;  %v901_v62 = vadd.f32 %v2385_v53, %v825_v48  ;;  %v902_v27 = vadd.f32 %v2387_v24, %v826_v38  ;;  %v753_v43 = vmul.f32 %v1416_v54, %v2089_v29  ;;  %v754_v49 = vmul.f32 %v1416_v54, %v2093_v3 }
 0x186   : > { %v1320_v15 = vpack.c.bf16 %v900_v37, %v899_v21  ;;  %v827_v12 = vmul.f32 %v2381_v55, %v751_v50  ;;  %v828_v58 = vmul.f32 %v2383_v61, %v752_v25  ;;  %v684_v42 = vadd.f32 1e-05, %v652_v19 }
 0x187   : > { %v1321_v52 = vpack.c.bf16 %v902_v27, %v901_v62  ;;  %v829_v63 = vmul.f32 %v2381_v55, %v753_v43  ;;  %v830_v1 = vmul.f32 %v2383_v61, %v754_v49  ;;  %v653_v35 = vmul.f32 0.00390625, %v583_v34 }
 0x188   : > { %v1418_v51 = vpop.eup %1417  ;;  %1150 = vst [vmem:[%s2405_s8 + $0x28] sm:$0xff] %v1320_v15  ;;  %v903_v41 = vadd.f32 %v2385_v53, %v827_v12  ;;  %v904_v29 = vadd.f32 %v2387_v24, %v828_v58  ;;  %1421 = vrsqrt.f32 %v684_v42  ;;  %v654_v3 = vmul.f32 0.00390625, %v586_v6  ;;  %v598_v14 = vpop.xlane.xlu1 %597 }
 0x189   : > { %v601_v59 = vpop.xlane.xlu0 %600  ;;  %1151 = vst [vmem:[%s2405_s8 + $0x30] sm:$0xff] %v1321_v52  ;;  %v905_v46 = vadd.f32 %v2385_v53, %v829_v63  ;;  %v906_v18 = vadd.f32 %v2387_v24, %v830_v1  ;;  %v755_v44 = vmul.f32 %v1418_v51, %v2097_v0  ;;  %v756_v34 = vmul.f32 %v1418_v51, %v2101_v5 }
 0x18a   : > { %v1322_v57 = vpack.c.bf16 %v904_v29, %v903_v41  ;;  %v685_v48 = vadd.f32 1e-05, %v653_v35  ;;  %v686_v38 = vadd.f32 1e-05, %v654_v3  ;;  %v655_v19 = vmul.f32 0.00390625, %v589_v45 }
 0x18b   : > { %v1323_v54 = vpack.c.bf16 %v906_v18, %v905_v46  ;;  %v831_v6 = vmul.f32 %v2381_v55, %v755_v44  ;;  %v832_v21 = vmul.f32 %v2383_v61, %v756_v34  ;;  %v656_v37 = vmul.f32 0.00390625, %v592_v56 }
 0x18c   : > { %v1420_v50 = vpop.eup %1419  ;;  %1152 = vst [vmem:[%s2405_s8 + $0x38] sm:$0xff] %v1322_v57  ;;  %1423 = vrsqrt.f32 %v685_v48  ;;  %v687_v25 = vadd.f32 1e-05, %v655_v19  ;;  %v657_v62 = vmul.f32 0.00390625, %v595_v26  ;;  %v658_v27 = vmul.f32 0.00390625, %v598_v14  ;;  %v604_v0 = vpop.xlane.xlu1 %603 }
 0x18d   : > { %v607_v43 = vpop.xlane.xlu0 %606  ;;  %1153 = vst [vmem:[%s2405_s8 + $0x40] sm:$0xff] %v1323_v54  ;;  %v907_v5 = vadd.f32 %v2385_v53, %v831_v6  ;;  %v908_v49 = vadd.f32 %v2387_v24, %v832_v21  ;;  %v757_v45 = vmul.f32 %v1420_v50, %v2113_v9  ;;  %v758_v15 = vmul.f32 %v1420_v50, %v2117_v10 }
 0x18e   : > { %1425 = vrsqrt.f32 %v686_v38  ;;  %v688_v56 = vadd.f32 1e-05, %v656_v37  ;;  %v689_v12 = vadd.f32 1e-05, %v657_v62  ;;  %v690_v58 = vadd.f32 1e-05, %v658_v27 }
 0x18f   : > { %v1324_v42 = vpack.c.bf16 %v908_v49, %v907_v5  ;;  %v833_v26 = vmul.f32 %v2381_v55, %v757_v45  ;;  %v834_v52 = vmul.f32 %v2383_v61, %v758_v15  ;;  %1427 = vrsqrt.f32 %v687_v25 }
 0x190   : > { %1429 = vrsqrt.f32 %v688_v56  ;;  %v659_v63 = vmul.f32 0.00390625, %v601_v59  ;;  %v660_v1 = vmul.f32 0.00390625, %v604_v0  ;;  %v661_v35 = vmul.f32 0.00390625, %v607_v43  ;;  %v610_v51 = vpop.xlane.xlu1 %609 }
 0x191   : > { %v613_v41 = vpop.xlane.xlu0 %612  ;;  %1154 = vst [vmem:[%s2405_s8 + $0x48] sm:$0xff] %v1324_v42  ;;  %v909_v9 = vadd.f32 %v2385_v53, %v833_v26  ;;  %v910_v10 = vadd.f32 %v2387_v24, %v834_v52  ;;  %1431 = vrsqrt.f32 %v689_v12  ;;  %v662_v29 = vmul.f32 0.00390625, %v610_v51  ;;  %v2822_v12 = vld [vmem:[#allocation8_spill] sm:$0xff]  ;;  %v2823_v26 = vld [vmem:[#allocation9_spill] sm:$0xff] }
 0x192   : > { %v1422_v3 = vpop.eup %1421  ;;  %1433 = vrsqrt.f32 %v690_v58  ;;  %v691_v14 = vadd.f32 1e-05, %v659_v63  ;;  %v692_v46 = vadd.f32 1e-05, %v660_v1  ;;  %v693_v18 = vadd.f32 1e-05, %v661_v35 }
 0x193   : > { %v1325_v44 = vpack.c.bf16 %v910_v10, %v909_v9  ;;  %v759_v59 = vmul.f32 %v1422_v3, %v2121_v7  ;;  %v760_v34 = vmul.f32 %v1422_v3, %v2125_v22  ;;  %v694_v57 = vadd.f32 1e-05, %v662_v29 }
 0x194   : > { %1435 = vrsqrt.f32 %v691_v14  ;;  %v663_v48 = vmul.f32 0.00390625, %v613_v41  ;;  %v616_v38 = vpop.xlane.xlu1 %615  ;;  %v2824_v41 = vld [vmem:[#allocation10_spill] sm:$0xff]  ;;  %v2825_v14 = vld [vmem:[#allocation11_spill] sm:$0xff] }
 0x195   : > { %v619_v19 = vpop.xlane.xlu0 %618  ;;  %1155 = vst [vmem:[%s2405_s8 + $0x50] sm:$0xff] %v1325_v44  ;;  %v835_v54 = vmul.f32 %v2381_v55, %v759_v59  ;;  %v836_v6 = vmul.f32 %v2383_v61, %v760_v34  ;;  %1437 = vrsqrt.f32 %v692_v46  ;;  %v664_v21 = vmul.f32 0.00390625, %v616_v38 }
 0x196   : > { %v1424_v37 = vpop.eup %1423  ;;  %1439 = vrsqrt.f32 %v693_v18  ;;  %v695_v50 = vadd.f32 1e-05, %v663_v48  ;;  %v665_v25 = vmul.f32 0.00390625, %v619_v19 }
 0x197   : > { %v911_v7 = vadd.f32 %v2385_v53, %v835_v54  ;;  %v912_v22 = vadd.f32 %v2387_v24, %v836_v6  ;;  %v761_v62 = vmul.f32 %v1424_v37, %v2137_v32  ;;  %v762_v27 = vmul.f32 %v1424_v37, %v2141_v13 }
 0x198   : > { %v1426_v0 = vpop.eup %1425  ;;  %1441 = vrsqrt.f32 %v694_v57  ;;  %v2478_v43 = vadd.f32 1e-05, %v664_v21  ;;  %v2480_v5 = vadd.f32 1e-05, %v665_v25  ;;  %v2493_v10 = vpop.xlane.xlu1 %621 }
 0x199   : > { %v1428_v49 = vpop.eup %1427  ;;  %v1326_v45 = vpack.c.bf16 %v912_v22, %v911_v7  ;;  %v837_v15 = vmul.f32 %v2381_v55, %v761_v62  ;;  %v838_v56 = vmul.f32 %v2383_v61, %v762_v27  ;;  %v763_v58 = vmul.f32 %v1426_v0, %v2822_v12  ;;  %v2511_v7 = vpop.xlane.xlu0 %624 }
 0x19a   : > { %v1430_v42 = vpop.eup %1429  ;;  %v764_v32 = vmul.f32 %v1426_v0, %v2823_v26  ;;  %v765_v13 = vmul.f32 %v1428_v49, %v2161_v16  ;;  %v766_v52 = vmul.f32 %v1428_v49, %v2165_v2  ;;  %1443 = vrsqrt.f32 %v695_v50  ;;  %v2827_v49 = vld [vmem:[#allocation13_spill] sm:$0xff] }
 0x19b   : > { %v1432_v63 = vpop.eup %1431  ;;  %1156 = vst [vmem:[%s2405_s8 + $0x58] sm:$0xff] %v1326_v45  ;;  %v913_v1 = vadd.f32 %v2385_v53, %v837_v15  ;;  %v914_v35 = vadd.f32 %v2387_v24, %v838_v56  ;;  %v839_v51 = vmul.f32 %v2381_v55, %v763_v58  ;;  %v767_v9 = vmul.f32 %v1430_v42, %v2824_v41  ;;  %v2829_v41 = vld [vmem:[#allocation15_spill] sm:$0xff] }
 0x19c   : > { %v1434_v29 = vpop.eup %1433  ;;  %v840_v3 = vmul.f32 %v2383_v61, %v764_v32  ;;  %v841_v16 = vmul.f32 %v2381_v55, %v765_v13  ;;  %v842_v2 = vmul.f32 %v2383_v61, %v766_v52  ;;  %v768_v46 = vmul.f32 %v1430_v42, %v2825_v14  ;;  %v628_v58 = vpop.xlane.xlu1 %627  ;;  %v2828_v52 = vld [vmem:[#allocation14_spill] sm:$0xff] }
 0x19d   : > { %v1327_v18 = vpack.c.bf16 %v914_v35, %v913_v1  ;;  %v915_v44 = vadd.f32 %v2385_v53, %v839_v51  ;;  %v843_v59 = vmul.f32 %v2381_v55, %v767_v9  ;;  %v769_v34 = vmul.f32 %v1432_v63, %v2185_v20  ;;  %v2826_v20 = vld [vmem:[#allocation12_spill] sm:$0xff] }
 0x19e   : > { %v1436_v57 = vpop.eup %1435  ;;  %v916_v48 = vadd.f32 %v2387_v24, %v840_v3  ;;  %v917_v38 = vadd.f32 %v2385_v53, %v841_v16  ;;  %v918_v19 = vadd.f32 %v2387_v24, %v842_v2  ;;  %v844_v54 = vmul.f32 %v2383_v61, %v768_v46 }
 0x19f   : > { %v1438_v6 = vpop.eup %1437  ;;  %1157 = vst [vmem:[%s2405_s8 + $0x60] sm:$0xff] %v1327_v18  ;;  %v919_v21 = vadd.f32 %v2385_v53, %v843_v59  ;;  %v770_v37 = vmul.f32 %v1432_v63, %v2189_v33  ;;  %v845_v50 = vmul.f32 %v2381_v55, %v769_v34  ;;  %v771_v25 = vmul.f32 %v1434_v29, %v2826_v20 }
 0x1a0   : > { %v1440_v22 = vpop.eup %1439  ;;  %v1328_v62 = vpack.c.bf16 %v916_v48, %v915_v44  ;;  %v1329_v27 = vpack.c.bf16 %v918_v19, %v917_v38  ;;  %v920_v0 = vadd.f32 %v2387_v24, %v844_v54  ;;  %v772_v45 = vmul.f32 %v1434_v29, %v2827_v49  ;;  %v631_v44 = vpop.xlane.xlu0 %630  ;;  %v2830_v19 = vld [vmem:[#allocation16_spill] sm:$0xff] }
 0x1a1   : > { %v846_v15 = vmul.f32 %v2383_v61, %v770_v37  ;;  %v921_v56 = vadd.f32 %v2385_v53, %v845_v50  ;;  %v847_v33 = vmul.f32 %v2381_v55, %v771_v25  ;;  %v773_v12 = vmul.f32 %v1436_v57, %v2209_v60 }
 0x1a2   : > { %v1442_v42 = vpop.eup %1441  ;;  %1158 = vst [vmem:[%s2405_s8 + $0x68] sm:$0xff] %v1328_v62  ;;  %1159 = vst [vmem:[%s2405_s8 + $0x70] sm:$0xff] %v1329_v27  ;;  %v1330_v26 = vpack.c.bf16 %v920_v0, %v919_v21  ;;  %v848_v32 = vmul.f32 %v2383_v61, %v772_v45  ;;  %v774_v13 = vmul.f32 %v1436_v57, %v2213_v8  ;;  %1445 = vrsqrt.f32 %v2478_v43 }
 0x1a3   : > { %v775_v63 = vmul.f32 %v1438_v6, %v2828_v52  ;;  %v922_v1 = vadd.f32 %v2387_v24, %v846_v15  ;;  %v923_v35 = vadd.f32 %v2385_v53, %v847_v33  ;;  %v849_v51 = vmul.f32 %v2381_v55, %v773_v12 }
 0x1a4   : > { %v776_v9 = vmul.f32 %v1438_v6, %v2829_v41  ;;  %v1444_v60 = vpop.eup %1443  ;;  %1160 = vst [vmem:[%s2405_s8 + $0x78] sm:$0xff] %v1330_v26  ;;  %v924_v29 = vadd.f32 %v2387_v24, %v848_v32  ;;  %v850_v3 = vmul.f32 %v2383_v61, %v774_v13  ;;  %v777_v8 = vmul.f32 %v1440_v22, %v2233_v23  ;;  %v2831_v6 = vld [vmem:[#allocation17_spill] sm:$0xff]  ;;  %v637_v33 = vpop.xlane.xlu0 %636 }
 0x1a5   : > { %v851_v16 = vmul.f32 %v2381_v55, %v775_v63  ;;  %v1331_v2 = vpack.c.bf16 %v922_v1, %v921_v56  ;;  %v925_v14 = vadd.f32 %v2385_v53, %v849_v51  ;;  %v778_v18 = vmul.f32 %v1440_v22, %v2237_v4  ;;  %v634_v4 = vpop.xlane.xlu1 %633 }
 0x1a6   : > { %v852_v46 = vmul.f32 %v2383_v61, %v776_v9  ;;  %v1332_v59 = vpack.c.bf16 %v924_v29, %v923_v35  ;;  %v926_v34 = vadd.f32 %v2387_v24, %v850_v3  ;;  %v853_v48 = vmul.f32 %v2381_v55, %v777_v8 }
 0x1a7   : > { %v927_v57 = vadd.f32 %v2385_v53, %v851_v16  ;;  %1161 = vst [vmem:[%s2405_s8 + $0x80] sm:$0xff] %v1331_v2  ;;  %v854_v38 = vmul.f32 %v2383_v61, %v778_v18  ;;  %v779_v54 = vmul.f32 %v1442_v42, %v2830_v19  ;;  %v780_v21 = vmul.f32 %v1442_v42, %v2831_v6  ;;  %v2832_v16 = vld [vmem:[#allocation18_spill] sm:$0xff]  ;;  %v2833_v2 = vld [vmem:[#allocation19_spill] sm:$0xff]  ;;  %v2834_v19 = vld [vmem:[#allocation20_spill] sm:$0xff] }
 0x1a8   : > { %v928_v23 = vadd.f32 %v2387_v24, %v852_v46  ;;  %1162 = vst [vmem:[%s2405_s8 + $0x88] sm:$0xff] %v1332_v59  ;;  %v1333_v37 = vpack.c.bf16 %v926_v34, %v925_v14  ;;  %v929_v50 = vadd.f32 %v2385_v53, %v853_v48  ;;  %v781_v20 = vmul.f32 %v1444_v60, %v2257_v11  ;;  %v2835_v6 = vld [vmem:[#allocation21_spill] sm:$0xff] }
 0x1a9   : > { %v782_v25 = vmul.f32 %v1444_v60, %v2261_v28  ;;  %v930_v62 = vadd.f32 %v2387_v24, %v854_v38  ;;  %v855_v27 = vmul.f32 %v2381_v55, %v779_v54  ;;  %v856_v0 = vmul.f32 %v2383_v61, %v780_v21  ;;  %v640_v63 = vpop.xlane.xlu1 %639 }
 0x1aa   : > { %v1334_v22 = vpack.c.bf16 %v928_v23, %v927_v57  ;;  %1163 = vst [vmem:[%s2405_s8 + $0x90] sm:$0xff] %v1333_v37  ;;  %v857_v49 = vmul.f32 %v2381_v55, %v781_v20  ;;  %v666_v15 = vmul.f32 0.00390625, %v2493_v10  ;;  %1447 = vrsqrt.f32 %v2480_v5 }
 0x1ab   : > { %v858_v45 = vmul.f32 %v2383_v61, %v782_v25  ;;  %v1335_v11 = vpack.c.bf16 %v930_v62, %v929_v50  ;;  %v931_v28 = vadd.f32 %v2385_v53, %v855_v27  ;;  %v932_v56 = vadd.f32 %v2387_v24, %v856_v0 }
 0x1ac   : > { %1164 = vst [vmem:[%s2405_s8 + $0x98] sm:$0xff] %v1334_v22  ;;  %v933_v12 = vadd.f32 %v2385_v53, %v857_v49  ;;  %v698_v26 = vadd.f32 1e-05, %v666_v15  ;;  %v667_v43 = vmul.f32 0.00390625, %v2511_v7  ;;  %v668_v32 = vmul.f32 0.00390625, %v628_v58  ;;  %v1446_v58 = vpop.eup %1445  ;;  %v2836_v49 = vld [vmem:[#allocation22_spill] sm:$0xff] }
 0x1ad   : > { %v934_v42 = vadd.f32 %v2387_v24, %v858_v45  ;;  %1165 = vst [vmem:[%s2405_s8 + $0xa0] sm:$0xff] %v1335_v11  ;;  %v1336_v10 = vpack.c.bf16 %v932_v56, %v931_v28  ;;  %v669_v13 = vmul.f32 0.00390625, %v631_v44  ;;  %v670_v52 = vmul.f32 0.00390625, %v634_v4  ;;  %v2837_v15 = vld [vmem:[#allocation23_spill] sm:$0xff] }
 0x1ae   : > { %1449 = vrsqrt.f32 %v698_v26  ;;  %v699_v35 = vadd.f32 1e-05, %v667_v43  ;;  %v671_v5 = vmul.f32 0.00390625, %v637_v33  ;;  %v700_v51 = vadd.f32 1e-05, %v668_v32 }
 0x1af   : > { %v1337_v1 = vpack.c.bf16 %v934_v42, %v933_v12  ;;  %1166 = vst [vmem:[%s2405_s8 + $0xa8] sm:$0xff] %v1336_v10  ;;  %v701_v41 = vadd.f32 1e-05, %v669_v13  ;;  %v702_v9 = vadd.f32 1e-05, %v670_v52  ;;  %v672_v29 = vmul.f32 0.00390625, %v640_v63 }
 0x1b0   : > { %1451 = vrsqrt.f32 %v699_v35  ;;  %v703_v60 = vadd.f32 1e-05, %v671_v5  ;;  %v783_v8 = vmul.f32 %v1446_v58, %v2832_v16  ;;  %v784_v14 = vmul.f32 %v1446_v58, %v2833_v2  ;;  %v2840_v16 = vld [vmem:[#allocation26_spill] sm:$0xff] }
 0x1b1   : > { %1167 = vst [vmem:[%s2405_s8 + $0xb0] sm:$0xff] %v1337_v1  ;;  %1453 = vrsqrt.f32 %v700_v51  ;;  %v704_v7 = vadd.f32 1e-05, %v672_v29  ;;  %v2839_v29 = vld [vmem:[#allocation25_spill] sm:$0xff] }
 0x1b2   : > { %1455 = vrsqrt.f32 %v701_v41  ;;  %v859_v44 = vmul.f32 %v2381_v55, %v783_v8  ;;  %v860_v59 = vmul.f32 %v2383_v61, %v784_v14  ;;  %v2838_v41 = vld [vmem:[#allocation24_spill] sm:$0xff] }
 0x1b3   : > { %1457 = vrsqrt.f32 %v702_v9 }
 0x1b4   : > { %1459 = vrsqrt.f32 %v703_v60  ;;  %v1448_v3 = vpop.eup %1447  ;;  %v935_v23 = vadd.f32 %v2385_v53, %v859_v44  ;;  %v936_v38 = vadd.f32 %v2387_v24, %v860_v59 }
 0x1b5   : > { %v785_v46 = vmul.f32 %v1448_v3, %v2281_v31  ;;  %v786_v18 = vmul.f32 %v1448_v3, %v2285_v36  ;;  %1461 = vrsqrt.f32 %v704_v7 }
 0x1b6   : > { %v1338_v50 = vpack.c.bf16 %v936_v38, %v935_v23 }
 0x1b7   : > { %v861_v57 = vmul.f32 %v2381_v55, %v785_v46  ;;  %v862_v48 = vmul.f32 %v2383_v61, %v786_v18  ;;  %v2841_v18 = vld [vmem:[#allocation27_spill] sm:$0xff] }
 0x1b8   : > { %v1450_v34 = vpop.eup %1449  ;;  %1168 = vst [vmem:[%s2405_s8 + $0xb8] sm:$0xff] %v1338_v50 }
 0x1b9   : > { %v787_v54 = vmul.f32 %v1450_v34, %v2834_v19  ;;  %v788_v31 = vmul.f32 %v1450_v34, %v2835_v6  ;;  %v937_v21 = vadd.f32 %v2385_v53, %v861_v57  ;;  %v938_v4 = vadd.f32 %v2387_v24, %v862_v48  ;;  %v2842_v57 = vld [vmem:[#allocation28_spill] sm:$0xff] }
 0x1ba   : > { %v1452_v36 = vpop.eup %1451 }
 0x1bb   : > { %v1454_v37 = vpop.eup %1453  ;;  %v863_v20 = vmul.f32 %v2381_v55, %v787_v54  ;;  %v864_v25 = vmul.f32 %v2383_v61, %v788_v31  ;;  %v789_v22 = vmul.f32 %v1452_v36, %v2305_v39  ;;  %v1339_v27 = vpack.c.bf16 %v938_v4, %v937_v21 }
 0x1bc   : > { %v1456_v62 = vpop.eup %1455  ;;  %v790_v0 = vmul.f32 %v1452_v36, %v2309_v17  ;;  %v791_v45 = vmul.f32 %v1454_v37, %v2836_v49  ;;  %v792_v11 = vmul.f32 %v1454_v37, %v2837_v15 }
 0x1bd   : > { %v1458_v28 = vpop.eup %1457  ;;  %v939_v56 = vadd.f32 %v2385_v53, %v863_v20  ;;  %v940_v33 = vadd.f32 %v2387_v24, %v864_v25  ;;  %v865_v12 = vmul.f32 %v2381_v55, %v789_v22  ;;  %v793_v42 = vmul.f32 %v1456_v62, %v2329_v47  ;;  %1169 = vst [vmem:[%s2405_s8 + $0xc0] sm:$0xff] %v1339_v27 }
 0x1be   : > { %v1460_v39 = vpop.eup %1459  ;;  %v866_v26 = vmul.f32 %v2383_v61, %v790_v0  ;;  %v867_v17 = vmul.f32 %v2381_v55, %v791_v45  ;;  %v868_v43 = vmul.f32 %v2383_v61, %v792_v11  ;;  %v794_v10 = vmul.f32 %v1456_v62, %v2333_v30 }
 0x1bf   : > { %v1340_v32 = vpack.c.bf16 %v940_v33, %v939_v56  ;;  %v941_v13 = vadd.f32 %v2385_v53, %v865_v12  ;;  %v869_v52 = vmul.f32 %v2381_v55, %v793_v42  ;;  %v795_v63 = vmul.f32 %v1458_v28, %v2337_v40  ;;  %v1462_v1 = vpop.eup %1461 }
 0x1c0   : > { %v942_v47 = vadd.f32 %v2387_v24, %v866_v26  ;;  %v943_v35 = vadd.f32 %v2385_v53, %v867_v17  ;;  %v944_v5 = vadd.f32 %v2387_v24, %v868_v43  ;;  %v870_v51 = vmul.f32 %v2383_v61, %v794_v10 }
 0x1c1   : > { %1170 = vst [vmem:[%s2405_s8 + $0xc8] sm:$0xff] %v1340_v32  ;;  %v945_v30 = vadd.f32 %v2385_v53, %v869_v52  ;;  %v796_v9 = vmul.f32 %v1458_v28, %v2838_v41  ;;  %v871_v60 = vmul.f32 %v2381_v55, %v795_v63  ;;  %v797_v40 = vmul.f32 %v1460_v39, %v2839_v29 }
 0x1c2   : > { %v1341_v7 = vpack.c.bf16 %v942_v47, %v941_v13  ;;  %v1342_v58 = vpack.c.bf16 %v944_v5, %v943_v35  ;;  %v946_v3 = vadd.f32 %v2387_v24, %v870_v51  ;;  %v798_v8 = vmul.f32 %v1460_v39, %v2840_v16 }
 0x1c3   : > { %v872_v2 = vmul.f32 %v2383_v61, %v796_v9  ;;  %v947_v14 = vadd.f32 %v2385_v53, %v871_v60  ;;  %v873_v46 = vmul.f32 %v2381_v55, %v797_v40  ;;  %v799_v44 = vmul.f32 %v1462_v1, %v2841_v18 }
 0x1c4   : > { %1171 = vst [vmem:[%s2405_s8 + $0xd0] sm:$0xff] %v1341_v7  ;;  %1172 = vst [vmem:[%s2405_s8 + $0xd8] sm:$0xff] %v1342_v58  ;;  %v1343_v59 = vpack.c.bf16 %v946_v3, %v945_v30  ;;  %v874_v34 = vmul.f32 %v2383_v61, %v798_v8  ;;  %v800_v48 = vmul.f32 %v1462_v1, %v2842_v57 }
 0x1c5   : > { %v948_v23 = vadd.f32 %v2387_v24, %v872_v2  ;;  %v949_v38 = vadd.f32 %v2385_v53, %v873_v46  ;;  %v875_v19 = vmul.f32 %v2381_v55, %v799_v44 }
 0x1c6   : > { %1173 = vst [vmem:[%s2405_s8 + $0xe0] sm:$0xff] %v1343_v59  ;;  %v950_v54 = vadd.f32 %v2387_v24, %v874_v34  ;;  %v876_v6 = vmul.f32 %v2383_v61, %v800_v48 }
 0x1c7   : > { %v1344_v31 = vpack.c.bf16 %v948_v23, %v947_v14  ;;  %v951_v36 = vadd.f32 %v2385_v53, %v875_v19 }
 0x1c8   : > { %v1345_v21 = vpack.c.bf16 %v950_v54, %v949_v38  ;;  %v952_v4 = vadd.f32 %v2387_v24, %v876_v6 }
 0x1c9   : > { %1174 = vst [vmem:[%s2405_s8 + $0xe8] sm:$0xff] %v1344_v31 }
 0x1ca   : > { %1175 = vst [vmem:[%s2405_s8 + $0xf0] sm:$0xff] %v1345_v21  ;;  %v1346_v55 = vpack.c.bf16 %v952_v4, %v951_v36 }
 0x1cc   : > { %1176 = vst [vmem:[%s2405_s8 + $0xf8] sm:$0xff] %v1346_v55 }
 0x1cd   : > { %1506 = shalt.err (!%p1503_p2)
}
 0x1ce   : > { %s1507_s9 = scalar_lea.hbm %s2632_s26, 4096  ;;  %s1511_s23 = scalar_lea.hbm %s2683_s3, 8192 }
 0x1cf   : > { %p1508_p4 = scmp.ne.s32.totalorder %s2632_s26, %s1507_s9  ;;  %p1512_p9 = scmp.lt.u32.totalorder %s2632_s26, %s2683_s3 }
 0x1d0   : > { %p1513_p1 = scmp.lt.u32.totalorder %s1511_s23, %s1507_s9  ;;  %p1515_p6 = scmp.lt.u32.totalorder %s1507_s9, %s2632_s26 }
 0x1d1   : > { %p1509_p5 = pnand %p1508_p4, %p2843_p11 }
 0x1d2   : > { %p1514_p3 = por %p1513_p1, %p1512_p9 }
 0x1d3   : > { %p1510_p7 = pneg %p1509_p5 }
 0x1d4   : > { %p1516_p12 = por %p1515_p6, %p1514_p3 }
 0x1d6   : > { %p1517_p13 = pnand %p1516_p12, %p1510_p7 }
 0x1d8   : > { %1520 = shalt.err (!%p1517_p13)
}
 0x1d9   : > { %s1565_s7 = smov 128   ;;  %s1566_s8 = smov 8  }
 0x1da   : > { %1351 = dma.vmem_to_hbm [thread:$0]  (%p2843_p11), %s2634_s19, 4096, %s2632_s26, %s1178_s16, %s1565_s7, %s1565_s7, %s1566_s8  }
 0x1db PF: > { %s1207_s17 = sand.u32 1, %s1547_s12   ;;  %p2844_p8 = scmp.ne.s32.totalorder %s2754_s25, 0 }
 0x1dc   : > { %p2845_p10 = scmp.ge.s32.totalorder %s1559_s15, 2  ;;  %s1208_s20 = scalar_lea.sflag [#allocation4], %s1207_s17 }
 0x1de   : > { %p1358_p0 = pnand %p2845_p10, %p2844_p8 }
 0x1e0   : > { %1542 = dma.done.wait (!%p1358_p0), %s1208_s20, 4096  }
 0x1e1   : > { %1544 = vsyncadd (!%p1358_p0), %s1208_s20, 4294963200  ;;  %p16_p2 = scmp.ge.s32.totalorder %s1612_s18, 4   ;;  %s2846_s12 = smov %s1551_s13 }
 0x1e2   : > { %s2847_s13 = smov %s1555_s14  ;;  %s2848_s14 = smov %s1624_s21 }
 0x1e3   : > { %s2849_s15 = smov %s1612_s18  ;;  %18 = sbr.rel (!%p16_p2) target bundleno = 5 (0x5), region = 77 }
 0x1ea   :  { %1213 = vsyncpa [#allocation3], 1 }
 0x1eb   :  { %1215 = vsyncpa [#allocation3 + $0x1], 1 }
 0x1ec   :  { %1216 = vsyncpa [#allocation4], 1 }
 0x1ed   :  { %1218 = vsyncpa [#allocation4 + $0x1], 1 }

</bundles_post_ra>
